<compile_context>
chip_gen: v7x
topology: tpu7x:2x2x1
jax: 0.10.0
libtpu: 0.0.40
codegen_flags: <defaults>
</compile_context>

<pallas_src>
import functools

import jax
import jax.numpy as jnp
from jax import lax
from jax.experimental import pallas as pl
from jax.experimental.pallas import tpu as pltpu

KSIZE = 7
PAD = 3
KK = KSIZE * KSIZE


def _roll_lanes(v, off, n):
    """out[:, p] = v[:, (p + off) % n] for a (rows, n) array; `off` is a static int."""
    if off % n == 0:
        return v
    return pltpu.roll(v, shift=(-off) % n, axis=1)


def _spatial_attn_kernel(w_ref, x_ref, o_ref, *, H, W):
    # w_ref: SMEM f32[2*7*7] -- Conv2d(2, 1, 7, padding=3, bias=False) weight,
    #        flattened from OIHW with O=1: [mean-channel taps, max-channel taps]
    # x_ref / o_ref: VMEM [1, C, H*W]  (lane-dense view of one batch element)
    HW = H * W
    x = x_ref[0].astype(jnp.float32)                    # (C, HW), f32 compute

    # Channel-wise reductions (dim=1 of NCHW) on the lane-dense slab.
    mean_f = jnp.mean(x, axis=0, keepdims=True)         # (1, HW)
    max_f = jnp.max(x, axis=0, keepdims=True)           # (1, HW)

    flat = lax.broadcasted_iota(jnp.int32, (1, HW), 1)  # flat position p
    col = flat % W                                       # column index of p
    zeros = jnp.zeros((1, HW), jnp.float32)

    # 7 column-rotated, column-masked copies of each feature map (hoisted out
    # of the kernel-row loop; reused by all 7 rows).  A flat rotation by c only
    # matches the 2-D column shift while the column index stays inside [0, W);
    # the same mask also kills the roll's wrap-around at the flat boundaries.
    mean_cols, max_cols = [], []
    for dj in range(KSIZE):
        c = dj - PAD
        if c == 0:
            mean_cols.append(mean_f)
            max_cols.append(max_f)
        else:
            ok = (col >= -c) & (col < W - c)
            mean_cols.append(jnp.where(ok, _roll_lanes(mean_f, c, HW), zeros))
            max_cols.append(jnp.where(ok, _roll_lanes(max_f, c, HW), zeros))

    # Row/column-decomposed 7x7 conv: per kernel row, a weighted sum of the
    # column-shifted maps (two independent chains: mean / max), then one row
    # rotation by a multiple of W, masked so out-of-range flat positions read
    # the conv's zero padding.  Two outer accumulators (di parity) break the
    # serial add chain for VALU ILP; the first terms initialise them directly.
    acc = [None, None]
    for di in range(KSIZE):
        base = di * KSIZE
        s_mean = mean_cols[0] * w_ref[base]
        s_max = max_cols[0] * w_ref[KK + base]
        for dj in range(1, KSIZE):
            s_mean = s_mean + mean_cols[dj] * w_ref[base + dj]
            s_max = s_max + max_cols[dj] * w_ref[KK + base + dj]
        s = s_mean + s_max
        row_off = (di - PAD) * W
        if row_off == 0:
            row_term = s
        else:
            row_ok = (flat >= -row_off) & (flat < HW - row_off)
            row_term = jnp.where(row_ok, _roll_lanes(s, row_off, HW), zeros)
        p = di & 1
        acc[p] = row_term if acc[p] is None else acc[p] + row_term

    attn = jax.nn.sigmoid(acc[0] + acc[1])               # (1, HW) attention map
    o_ref[0] = (x * attn).astype(o_ref.dtype)            # lane-dense store


@jax.jit
def spatial_attention(x, weight):
    """x: [B, C, H, W]; weight: [1, 2, 7, 7] (Conv2d(2, 1, 7, padding=3, bias=False))."""
    B, C, H, W = x.shape
    HW = H * W
    w_flat = weight.reshape(-1).astype(jnp.float32)      # (2*49,)
    x_flat = x.reshape(B, C, HW)                         # free contiguous view

    # Double-buffered input + output blocks plus small conv temporaries.
    block_bytes = C * HW * x.dtype.itemsize
    vmem_limit = int(min(max(4 * block_bytes + (4 << 20), 32 << 20), 64 << 20))
    # TODO(synk): for very large activations (4*C*H*W*itemsize beyond ~56 MiB)
    # add a C-tile grid axis with a two-phase sum/max reduction so each block
    # still fits v7x's 64 MiB VMEM.

    kernel = functools.partial(_spatial_attn_kernel, H=H, W=W)
    out_flat = pl.pallas_call(
        kernel,
        out_shape=jax.ShapeDtypeStruct((B, C, HW), x.dtype),
        grid_spec=pltpu.PrefetchScalarGridSpec(
            num_scalar_prefetch=0,
            grid=(B,),
            in_specs=[
                pl.BlockSpec(memory_space=pltpu.MemorySpace.SMEM),    # conv weights
                pl.BlockSpec((1, C, HW), lambda b: (b, 0, 0)),        # x block
            ],
            out_specs=pl.BlockSpec((1, C, HW), lambda b: (b, 0, 0)),
        ),
        compiler_params=pltpu.CompilerParams(
            dimension_semantics=("parallel",),            # batch is independent
            vmem_limit_bytes=vmem_limit),
    )(w_flat, x_flat)
    return out_flat.reshape(B, C, H, W)


def _reference(x, weight):
    """Pure-JAX reference mirroring the PyTorch forward."""
    x1 = jnp.mean(x, axis=1, keepdims=True)
    x2 = jnp.max(x, axis=1, keepdims=True)
    feats = jnp.concatenate([x1, x2], axis=1)             # (B, 2, H, W)
    conv = lax.conv_general_dilated(
        feats, weight,
        window_strides=(1, 1),
        padding=((PAD, PAD), (PAD, PAD)),
        dimension_numbers=("NCHW", "OIHW", "NCHW"))
    attn = jax.nn.sigmoid(conv)                           # (B, 1, H, W)
    return x * attn


if __name__ == "__main__":
    key = jax.random.PRNGKey(0)
    kx, kw = jax.random.split(key)

    B, C, H, W = 2, 4, 16, 16
    x = jax.random.normal(kx, (B, C, H, W), dtype=jnp.float32)

    # Deterministic synthetic init for Conv2d(2, 1, 7, bias=False): (1, 2, 7, 7).
    fan_in = 2 * KSIZE * KSIZE
    bound = 1.0 / (fan_in ** 0.5)
    weight = jax.random.uniform(kw, (1, 2, KSIZE, KSIZE),
                                dtype=jnp.float32, minval=-bound, maxval=bound)

    out = jax.block_until_ready(spatial_attention(x, weight))

    ref = _reference(x, weight)
    assert out.shape == (B, C, H, W)
    err = jnp.max(jnp.abs(out - ref))
    assert jnp.allclose(out, ref, atol=1e-5, rtol=1e-5), f"max abs err {err}"

    print("KERNEL_OK")
</pallas_src>

<mosaic_0001>
module attributes {stable_mosaic.version = 11 : i64} {
  func.func @_spatial_attn_kernel(%arg0: i32, %arg1: memref<98xf32, #tpu.memory_space<smem>>, %arg2: memref<1x4x256xf32, #tpu.memory_space<vmem>>, %arg3: memref<1x4x256xf32, #tpu.memory_space<vmem>>) attributes {dimension_semantics = [#tpu.dimension_semantics<parallel>], iteration_bounds = array<i64: 2>, scalar_prefetch = 0 : i64, scratch_operands = 0 : i64, tpu.core_type = #tpu.core_type<tc>, window_params = [{transform_indices = @transform_0, window_bounds = array<i64: 98>}, {transform_indices = @transform_1, window_bounds = array<i64: 1, 4, 256>}, {transform_indices = @transform_2, window_bounds = array<i64: 1, 4, 256>}]} {
    %c0 = arith.constant 0 : index
    %c0_0 = arith.constant 0 : index
    %c0_1 = arith.constant 0 : index
    %0 = vector.load %arg2[%c0, %c0_0, %c0_1] : memref<1x4x256xf32, #tpu.memory_space<vmem>>, vector<1x4x256xf32>
    %1 = vector.shape_cast %0 : vector<1x4x256xf32> to vector<4x256xf32>
    %cst = arith.constant dense<0.000000e+00> : vector<256xf32>
    %2 = vector.multi_reduction <add>, %1, %cst [0] : vector<4x256xf32> to vector<256xf32>
    %3 = vector.shape_cast %2 : vector<256xf32> to vector<1x256xf32>
    %cst_2 = arith.constant 4.000000e+00 : f32
    %4 = vector.broadcast %cst_2 : f32 to vector<1x256xf32>
    %5 = arith.divf %3, %4 : vector<1x256xf32>
    %cst_3 = arith.constant dense<0xFF800000> : vector<256xf32>
    %6 = vector.multi_reduction <maximumf>, %1, %cst_3 [0] : vector<4x256xf32> to vector<256xf32>
    %7 = vector.shape_cast %6 : vector<256xf32> to vector<1x256xf32>
    %8 = tpu.iota {dimensions = array<i32: 1>} : vector<1x256xi32>
    %c16_i32 = arith.constant 16 : i32
    %c0_i32 = arith.constant 0 : i32
    %9 = arith.cmpi eq, %c16_i32, %c0_i32 : i32
    %c1_i32 = arith.constant 1 : i32
    %10 = arith.select %9, %c1_i32, %c16_i32 : i32
    %11 = vector.broadcast %10 : i32 to vector<1x256xi32>
    %12 = arith.remsi %8, %11 : vector<1x256xi32>
    %c0_i32_4 = arith.constant 0 : i32
    %13 = vector.broadcast %c0_i32_4 : i32 to vector<1x256xi32>
    %14 = arith.cmpi ne, %12, %13 : vector<1x256xi32>
    %c0_i32_5 = arith.constant 0 : i32
    %15 = vector.broadcast %c0_i32_5 : i32 to vector<1x256xi32>
    %16 = arith.cmpi slt, %12, %15 : vector<1x256xi32>
    %c0_i32_6 = arith.constant 0 : i32
    %17 = arith.cmpi slt, %10, %c0_i32_6 : i32
    %18 = vector.broadcast %17 : i1 to vector<1x256xi1>
    %19 = vector.broadcast %18 : vector<1x256xi1> to vector<1x256xi1>
    %20 = arith.xori %16, %19 : vector<1x256xi1>
    %21 = arith.andi %20, %14 : vector<1x256xi1>
    %22 = vector.broadcast %10 : i32 to vector<1x256xi32>
    %23 = arith.addi %12, %22 : vector<1x256xi32>
    %24 = arith.select %21, %23, %12 : vector<1x256xi1>, vector<1x256xi32>
    %cst_7 = arith.constant 0.000000e+00 : f32
    %25 = vector.broadcast %cst_7 : f32 to vector<1x256xf32>
    %c3_i32 = arith.constant 3 : i32
    %26 = vector.broadcast %c3_i32 : i32 to vector<1x256xi32>
    %27 = arith.cmpi sge, %24, %26 : vector<1x256xi32>
    %c19_i32 = arith.constant 19 : i32
    %28 = vector.broadcast %c19_i32 : i32 to vector<1x256xi32>
    %29 = arith.cmpi slt, %24, %28 : vector<1x256xi32>
    %30 = arith.andi %27, %29 : vector<1x256xi1>
    %c3_i32_8 = arith.constant 3 : i32
    %31 = tpu.dynamic_rotate %5 by %c3_i32_8 dim 1 : vector<1x256xf32>, i32 -> vector<1x256xf32>
    %32 = arith.select %30, %31, %25 : vector<1x256xi1>, vector<1x256xf32>
    %c3_i32_9 = arith.constant 3 : i32
    %33 = tpu.dynamic_rotate %7 by %c3_i32_9 dim 1 : vector<1x256xf32>, i32 -> vector<1x256xf32>
    %34 = arith.select %30, %33, %25 : vector<1x256xi1>, vector<1x256xf32>
    %c2_i32 = arith.constant 2 : i32
    %35 = vector.broadcast %c2_i32 : i32 to vector<1x256xi32>
    %36 = arith.cmpi sge, %24, %35 : vector<1x256xi32>
    %c18_i32 = arith.constant 18 : i32
    %37 = vector.broadcast %c18_i32 : i32 to vector<1x256xi32>
    %38 = arith.cmpi slt, %24, %37 : vector<1x256xi32>
    %39 = arith.andi %36, %38 : vector<1x256xi1>
    %c2_i32_10 = arith.constant 2 : i32
    %40 = tpu.dynamic_rotate %5 by %c2_i32_10 dim 1 : vector<1x256xf32>, i32 -> vector<1x256xf32>
    %41 = arith.select %39, %40, %25 : vector<1x256xi1>, vector<1x256xf32>
    %c2_i32_11 = arith.constant 2 : i32
    %42 = tpu.dynamic_rotate %7 by %c2_i32_11 dim 1 : vector<1x256xf32>, i32 -> vector<1x256xf32>
    %43 = arith.select %39, %42, %25 : vector<1x256xi1>, vector<1x256xf32>
    %c1_i32_12 = arith.constant 1 : i32
    %44 = vector.broadcast %c1_i32_12 : i32 to vector<1x256xi32>
    %45 = arith.cmpi sge, %24, %44 : vector<1x256xi32>
    %c17_i32 = arith.constant 17 : i32
    %46 = vector.broadcast %c17_i32 : i32 to vector<1x256xi32>
    %47 = arith.cmpi slt, %24, %46 : vector<1x256xi32>
    %48 = arith.andi %45, %47 : vector<1x256xi1>
    %c1_i32_13 = arith.constant 1 : i32
    %49 = tpu.dynamic_rotate %5 by %c1_i32_13 dim 1 : vector<1x256xf32>, i32 -> vector<1x256xf32>
    %50 = arith.select %48, %49, %25 : vector<1x256xi1>, vector<1x256xf32>
    %c1_i32_14 = arith.constant 1 : i32
    %51 = tpu.dynamic_rotate %7 by %c1_i32_14 dim 1 : vector<1x256xf32>, i32 -> vector<1x256xf32>
    %52 = arith.select %48, %51, %25 : vector<1x256xi1>, vector<1x256xf32>
    %c-1_i32 = arith.constant -1 : i32
    %53 = vector.broadcast %c-1_i32 : i32 to vector<1x256xi32>
    %54 = arith.cmpi sge, %24, %53 : vector<1x256xi32>
    %c15_i32 = arith.constant 15 : i32
    %55 = vector.broadcast %c15_i32 : i32 to vector<1x256xi32>
    %56 = arith.cmpi slt, %24, %55 : vector<1x256xi32>
    %57 = arith.andi %54, %56 : vector<1x256xi1>
    %c255_i32 = arith.constant 255 : i32
    %58 = tpu.dynamic_rotate %5 by %c255_i32 dim 1 : vector<1x256xf32>, i32 -> vector<1x256xf32>
    %59 = arith.select %57, %58, %25 : vector<1x256xi1>, vector<1x256xf32>
    %c255_i32_15 = arith.constant 255 : i32
    %60 = tpu.dynamic_rotate %7 by %c255_i32_15 dim 1 : vector<1x256xf32>, i32 -> vector<1x256xf32>
    %61 = arith.select %57, %60, %25 : vector<1x256xi1>, vector<1x256xf32>
    %c-2_i32 = arith.constant -2 : i32
    %62 = vector.broadcast %c-2_i32 : i32 to vector<1x256xi32>
    %63 = arith.cmpi sge, %24, %62 : vector<1x256xi32>
    %c14_i32 = arith.constant 14 : i32
    %64 = vector.broadcast %c14_i32 : i32 to vector<1x256xi32>
    %65 = arith.cmpi slt, %24, %64 : vector<1x256xi32>
    %66 = arith.andi %63, %65 : vector<1x256xi1>
    %c254_i32 = arith.constant 254 : i32
    %67 = tpu.dynamic_rotate %5 by %c254_i32 dim 1 : vector<1x256xf32>, i32 -> vector<1x256xf32>
    %68 = arith.select %66, %67, %25 : vector<1x256xi1>, vector<1x256xf32>
    %c254_i32_16 = arith.constant 254 : i32
    %69 = tpu.dynamic_rotate %7 by %c254_i32_16 dim 1 : vector<1x256xf32>, i32 -> vector<1x256xf32>
    %70 = arith.select %66, %69, %25 : vector<1x256xi1>, vector<1x256xf32>
    %c-3_i32 = arith.constant -3 : i32
    %71 = vector.broadcast %c-3_i32 : i32 to vector<1x256xi32>
    %72 = arith.cmpi sge, %24, %71 : vector<1x256xi32>
    %c13_i32 = arith.constant 13 : i32
    %73 = vector.broadcast %c13_i32 : i32 to vector<1x256xi32>
    %74 = arith.cmpi slt, %24, %73 : vector<1x256xi32>
    %75 = arith.andi %72, %74 : vector<1x256xi1>
    %c253_i32 = arith.constant 253 : i32
    %76 = tpu.dynamic_rotate %5 by %c253_i32 dim 1 : vector<1x256xf32>, i32 -> vector<1x256xf32>
    %77 = arith.select %75, %76, %25 : vector<1x256xi1>, vector<1x256xf32>
    %c253_i32_17 = arith.constant 253 : i32
    %78 = tpu.dynamic_rotate %7 by %c253_i32_17 dim 1 : vector<1x256xf32>, i32 -> vector<1x256xf32>
    %79 = arith.select %75, %78, %25 : vector<1x256xi1>, vector<1x256xf32>
    %c0_18 = arith.constant 0 : index
    %80 = memref.load %arg1[%c0_18] : memref<98xf32, #tpu.memory_space<smem>>
    %81 = vector.broadcast %80 : f32 to vector<1x256xf32>
    %82 = arith.mulf %32, %81 : vector<1x256xf32>
    %c49 = arith.constant 49 : index
    %83 = memref.load %arg1[%c49] : memref<98xf32, #tpu.memory_space<smem>>
    %84 = vector.broadcast %83 : f32 to vector<1x256xf32>
    %85 = arith.mulf %34, %84 : vector<1x256xf32>
    %c1 = arith.constant 1 : index
    %86 = memref.load %arg1[%c1] : memref<98xf32, #tpu.memory_space<smem>>
    %87 = vector.broadcast %86 : f32 to vector<1x256xf32>
    %88 = arith.mulf %41, %87 : vector<1x256xf32>
    %89 = arith.addf %82, %88 : vector<1x256xf32>
    %c50 = arith.constant 50 : index
    %90 = memref.load %arg1[%c50] : memref<98xf32, #tpu.memory_space<smem>>
    %91 = vector.broadcast %90 : f32 to vector<1x256xf32>
    %92 = arith.mulf %43, %91 : vector<1x256xf32>
    %93 = arith.addf %85, %92 : vector<1x256xf32>
    %c2 = arith.constant 2 : index
    %94 = memref.load %arg1[%c2] : memref<98xf32, #tpu.memory_space<smem>>
    %95 = vector.broadcast %94 : f32 to vector<1x256xf32>
    %96 = arith.mulf %50, %95 : vector<1x256xf32>
    %97 = arith.addf %89, %96 : vector<1x256xf32>
    %c51 = arith.constant 51 : index
    %98 = memref.load %arg1[%c51] : memref<98xf32, #tpu.memory_space<smem>>
    %99 = vector.broadcast %98 : f32 to vector<1x256xf32>
    %100 = arith.mulf %52, %99 : vector<1x256xf32>
    %101 = arith.addf %93, %100 : vector<1x256xf32>
    %c3 = arith.constant 3 : index
    %102 = memref.load %arg1[%c3] : memref<98xf32, #tpu.memory_space<smem>>
    %103 = vector.broadcast %102 : f32 to vector<1x256xf32>
    %104 = arith.mulf %5, %103 : vector<1x256xf32>
    %105 = arith.addf %97, %104 : vector<1x256xf32>
    %c52 = arith.constant 52 : index
    %106 = memref.load %arg1[%c52] : memref<98xf32, #tpu.memory_space<smem>>
    %107 = vector.broadcast %106 : f32 to vector<1x256xf32>
    %108 = arith.mulf %7, %107 : vector<1x256xf32>
    %109 = arith.addf %101, %108 : vector<1x256xf32>
    %c4 = arith.constant 4 : index
    %110 = memref.load %arg1[%c4] : memref<98xf32, #tpu.memory_space<smem>>
    %111 = vector.broadcast %110 : f32 to vector<1x256xf32>
    %112 = arith.mulf %59, %111 : vector<1x256xf32>
    %113 = arith.addf %105, %112 : vector<1x256xf32>
    %c53 = arith.constant 53 : index
    %114 = memref.load %arg1[%c53] : memref<98xf32, #tpu.memory_space<smem>>
    %115 = vector.broadcast %114 : f32 to vector<1x256xf32>
    %116 = arith.mulf %61, %115 : vector<1x256xf32>
    %117 = arith.addf %109, %116 : vector<1x256xf32>
    %c5 = arith.constant 5 : index
    %118 = memref.load %arg1[%c5] : memref<98xf32, #tpu.memory_space<smem>>
    %119 = vector.broadcast %118 : f32 to vector<1x256xf32>
    %120 = arith.mulf %68, %119 : vector<1x256xf32>
    %121 = arith.addf %113, %120 : vector<1x256xf32>
    %c54 = arith.constant 54 : index
    %122 = memref.load %arg1[%c54] : memref<98xf32, #tpu.memory_space<smem>>
    %123 = vector.broadcast %122 : f32 to vector<1x256xf32>
    %124 = arith.mulf %70, %123 : vector<1x256xf32>
    %125 = arith.addf %117, %124 : vector<1x256xf32>
    %c6 = arith.constant 6 : index
    %126 = memref.load %arg1[%c6] : memref<98xf32, #tpu.memory_space<smem>>
    %127 = vector.broadcast %126 : f32 to vector<1x256xf32>
    %128 = arith.mulf %77, %127 : vector<1x256xf32>
    %129 = arith.addf %121, %128 : vector<1x256xf32>
    %c55 = arith.constant 55 : index
    %130 = memref.load %arg1[%c55] : memref<98xf32, #tpu.memory_space<smem>>
    %131 = vector.broadcast %130 : f32 to vector<1x256xf32>
    %132 = arith.mulf %79, %131 : vector<1x256xf32>
    %133 = arith.addf %125, %132 : vector<1x256xf32>
    %134 = arith.addf %129, %133 : vector<1x256xf32>
    %c48_i32 = arith.constant 48 : i32
    %135 = vector.broadcast %c48_i32 : i32 to vector<1x256xi32>
    %136 = arith.cmpi sge, %8, %135 : vector<1x256xi32>
    %c304_i32 = arith.constant 304 : i32
    %137 = vector.broadcast %c304_i32 : i32 to vector<1x256xi32>
    %138 = arith.cmpi slt, %8, %137 : vector<1x256xi32>
    %139 = arith.andi %136, %138 : vector<1x256xi1>
    %c48_i32_19 = arith.constant 48 : i32
    %140 = tpu.dynamic_rotate %134 by %c48_i32_19 dim 1 : vector<1x256xf32>, i32 -> vector<1x256xf32>
    %141 = arith.select %139, %140, %25 : vector<1x256xi1>, vector<1x256xf32>
    %c7 = arith.constant 7 : index
    %142 = memref.load %arg1[%c7] : memref<98xf32, #tpu.memory_space<smem>>
    %143 = vector.broadcast %142 : f32 to vector<1x256xf32>
    %144 = arith.mulf %32, %143 : vector<1x256xf32>
    %c56 = arith.constant 56 : index
    %145 = memref.load %arg1[%c56] : memref<98xf32, #tpu.memory_space<smem>>
    %146 = vector.broadcast %145 : f32 to vector<1x256xf32>
    %147 = arith.mulf %34, %146 : vector<1x256xf32>
    %c8 = arith.constant 8 : index
    %148 = memref.load %arg1[%c8] : memref<98xf32, #tpu.memory_space<smem>>
    %149 = vector.broadcast %148 : f32 to vector<1x256xf32>
    %150 = arith.mulf %41, %149 : vector<1x256xf32>
    %151 = arith.addf %144, %150 : vector<1x256xf32>
    %c57 = arith.constant 57 : index
    %152 = memref.load %arg1[%c57] : memref<98xf32, #tpu.memory_space<smem>>
    %153 = vector.broadcast %152 : f32 to vector<1x256xf32>
    %154 = arith.mulf %43, %153 : vector<1x256xf32>
    %155 = arith.addf %147, %154 : vector<1x256xf32>
    %c9 = arith.constant 9 : index
    %156 = memref.load %arg1[%c9] : memref<98xf32, #tpu.memory_space<smem>>
    %157 = vector.broadcast %156 : f32 to vector<1x256xf32>
    %158 = arith.mulf %50, %157 : vector<1x256xf32>
    %159 = arith.addf %151, %158 : vector<1x256xf32>
    %c58 = arith.constant 58 : index
    %160 = memref.load %arg1[%c58] : memref<98xf32, #tpu.memory_space<smem>>
    %161 = vector.broadcast %160 : f32 to vector<1x256xf32>
    %162 = arith.mulf %52, %161 : vector<1x256xf32>
    %163 = arith.addf %155, %162 : vector<1x256xf32>
    %c10 = arith.constant 10 : index
    %164 = memref.load %arg1[%c10] : memref<98xf32, #tpu.memory_space<smem>>
    %165 = vector.broadcast %164 : f32 to vector<1x256xf32>
    %166 = arith.mulf %5, %165 : vector<1x256xf32>
    %167 = arith.addf %159, %166 : vector<1x256xf32>
    %c59 = arith.constant 59 : index
    %168 = memref.load %arg1[%c59] : memref<98xf32, #tpu.memory_space<smem>>
    %169 = vector.broadcast %168 : f32 to vector<1x256xf32>
    %170 = arith.mulf %7, %169 : vector<1x256xf32>
    %171 = arith.addf %163, %170 : vector<1x256xf32>
    %c11 = arith.constant 11 : index
    %172 = memref.load %arg1[%c11] : memref<98xf32, #tpu.memory_space<smem>>
    %173 = vector.broadcast %172 : f32 to vector<1x256xf32>
    %174 = arith.mulf %59, %173 : vector<1x256xf32>
    %175 = arith.addf %167, %174 : vector<1x256xf32>
    %c60 = arith.constant 60 : index
    %176 = memref.load %arg1[%c60] : memref<98xf32, #tpu.memory_space<smem>>
    %177 = vector.broadcast %176 : f32 to vector<1x256xf32>
    %178 = arith.mulf %61, %177 : vector<1x256xf32>
    %179 = arith.addf %171, %178 : vector<1x256xf32>
    %c12 = arith.constant 12 : index
    %180 = memref.load %arg1[%c12] : memref<98xf32, #tpu.memory_space<smem>>
    %181 = vector.broadcast %180 : f32 to vector<1x256xf32>
    %182 = arith.mulf %68, %181 : vector<1x256xf32>
    %183 = arith.addf %175, %182 : vector<1x256xf32>
    %c61 = arith.constant 61 : index
    %184 = memref.load %arg1[%c61] : memref<98xf32, #tpu.memory_space<smem>>
    %185 = vector.broadcast %184 : f32 to vector<1x256xf32>
    %186 = arith.mulf %70, %185 : vector<1x256xf32>
    %187 = arith.addf %179, %186 : vector<1x256xf32>
    %c13 = arith.constant 13 : index
    %188 = memref.load %arg1[%c13] : memref<98xf32, #tpu.memory_space<smem>>
    %189 = vector.broadcast %188 : f32 to vector<1x256xf32>
    %190 = arith.mulf %77, %189 : vector<1x256xf32>
    %191 = arith.addf %183, %190 : vector<1x256xf32>
    %c62 = arith.constant 62 : index
    %192 = memref.load %arg1[%c62] : memref<98xf32, #tpu.memory_space<smem>>
    %193 = vector.broadcast %192 : f32 to vector<1x256xf32>
    %194 = arith.mulf %79, %193 : vector<1x256xf32>
    %195 = arith.addf %187, %194 : vector<1x256xf32>
    %196 = arith.addf %191, %195 : vector<1x256xf32>
    %c32_i32 = arith.constant 32 : i32
    %197 = vector.broadcast %c32_i32 : i32 to vector<1x256xi32>
    %198 = arith.cmpi sge, %8, %197 : vector<1x256xi32>
    %c288_i32 = arith.constant 288 : i32
    %199 = vector.broadcast %c288_i32 : i32 to vector<1x256xi32>
    %200 = arith.cmpi slt, %8, %199 : vector<1x256xi32>
    %201 = arith.andi %198, %200 : vector<1x256xi1>
    %c32_i32_20 = arith.constant 32 : i32
    %202 = tpu.dynamic_rotate %196 by %c32_i32_20 dim 1 : vector<1x256xf32>, i32 -> vector<1x256xf32>
    %203 = arith.select %201, %202, %25 : vector<1x256xi1>, vector<1x256xf32>
    %c14 = arith.constant 14 : index
    %204 = memref.load %arg1[%c14] : memref<98xf32, #tpu.memory_space<smem>>
    %205 = vector.broadcast %204 : f32 to vector<1x256xf32>
    %206 = arith.mulf %32, %205 : vector<1x256xf32>
    %c63 = arith.constant 63 : index
    %207 = memref.load %arg1[%c63] : memref<98xf32, #tpu.memory_space<smem>>
    %208 = vector.broadcast %207 : f32 to vector<1x256xf32>
    %209 = arith.mulf %34, %208 : vector<1x256xf32>
    %c15 = arith.constant 15 : index
    %210 = memref.load %arg1[%c15] : memref<98xf32, #tpu.memory_space<smem>>
    %211 = vector.broadcast %210 : f32 to vector<1x256xf32>
    %212 = arith.mulf %41, %211 : vector<1x256xf32>
    %213 = arith.addf %206, %212 : vector<1x256xf32>
    %c64 = arith.constant 64 : index
    %214 = memref.load %arg1[%c64] : memref<98xf32, #tpu.memory_space<smem>>
    %215 = vector.broadcast %214 : f32 to vector<1x256xf32>
    %216 = arith.mulf %43, %215 : vector<1x256xf32>
    %217 = arith.addf %209, %216 : vector<1x256xf32>
    %c16 = arith.constant 16 : index
    %218 = memref.load %arg1[%c16] : memref<98xf32, #tpu.memory_space<smem>>
    %219 = vector.broadcast %218 : f32 to vector<1x256xf32>
    %220 = arith.mulf %50, %219 : vector<1x256xf32>
    %221 = arith.addf %213, %220 : vector<1x256xf32>
    %c65 = arith.constant 65 : index
    %222 = memref.load %arg1[%c65] : memref<98xf32, #tpu.memory_space<smem>>
    %223 = vector.broadcast %222 : f32 to vector<1x256xf32>
    %224 = arith.mulf %52, %223 : vector<1x256xf32>
    %225 = arith.addf %217, %224 : vector<1x256xf32>
    %c17 = arith.constant 17 : index
    %226 = memref.load %arg1[%c17] : memref<98xf32, #tpu.memory_space<smem>>
    %227 = vector.broadcast %226 : f32 to vector<1x256xf32>
    %228 = arith.mulf %5, %227 : vector<1x256xf32>
    %229 = arith.addf %221, %228 : vector<1x256xf32>
    %c66 = arith.constant 66 : index
    %230 = memref.load %arg1[%c66] : memref<98xf32, #tpu.memory_space<smem>>
    %231 = vector.broadcast %230 : f32 to vector<1x256xf32>
    %232 = arith.mulf %7, %231 : vector<1x256xf32>
    %233 = arith.addf %225, %232 : vector<1x256xf32>
    %c18 = arith.constant 18 : index
    %234 = memref.load %arg1[%c18] : memref<98xf32, #tpu.memory_space<smem>>
    %235 = vector.broadcast %234 : f32 to vector<1x256xf32>
    %236 = arith.mulf %59, %235 : vector<1x256xf32>
    %237 = arith.addf %229, %236 : vector<1x256xf32>
    %c67 = arith.constant 67 : index
    %238 = memref.load %arg1[%c67] : memref<98xf32, #tpu.memory_space<smem>>
    %239 = vector.broadcast %238 : f32 to vector<1x256xf32>
    %240 = arith.mulf %61, %239 : vector<1x256xf32>
    %241 = arith.addf %233, %240 : vector<1x256xf32>
    %c19 = arith.constant 19 : index
    %242 = memref.load %arg1[%c19] : memref<98xf32, #tpu.memory_space<smem>>
    %243 = vector.broadcast %242 : f32 to vector<1x256xf32>
    %244 = arith.mulf %68, %243 : vector<1x256xf32>
    %245 = arith.addf %237, %244 : vector<1x256xf32>
    %c68 = arith.constant 68 : index
    %246 = memref.load %arg1[%c68] : memref<98xf32, #tpu.memory_space<smem>>
    %247 = vector.broadcast %246 : f32 to vector<1x256xf32>
    %248 = arith.mulf %70, %247 : vector<1x256xf32>
    %249 = arith.addf %241, %248 : vector<1x256xf32>
    %c20 = arith.constant 20 : index
    %250 = memref.load %arg1[%c20] : memref<98xf32, #tpu.memory_space<smem>>
    %251 = vector.broadcast %250 : f32 to vector<1x256xf32>
    %252 = arith.mulf %77, %251 : vector<1x256xf32>
    %253 = arith.addf %245, %252 : vector<1x256xf32>
    %c69 = arith.constant 69 : index
    %254 = memref.load %arg1[%c69] : memref<98xf32, #tpu.memory_space<smem>>
    %255 = vector.broadcast %254 : f32 to vector<1x256xf32>
    %256 = arith.mulf %79, %255 : vector<1x256xf32>
    %257 = arith.addf %249, %256 : vector<1x256xf32>
    %258 = arith.addf %253, %257 : vector<1x256xf32>
    %c16_i32_21 = arith.constant 16 : i32
    %259 = vector.broadcast %c16_i32_21 : i32 to vector<1x256xi32>
    %260 = arith.cmpi sge, %8, %259 : vector<1x256xi32>
    %c272_i32 = arith.constant 272 : i32
    %261 = vector.broadcast %c272_i32 : i32 to vector<1x256xi32>
    %262 = arith.cmpi slt, %8, %261 : vector<1x256xi32>
    %263 = arith.andi %260, %262 : vector<1x256xi1>
    %c16_i32_22 = arith.constant 16 : i32
    %264 = tpu.dynamic_rotate %258 by %c16_i32_22 dim 1 : vector<1x256xf32>, i32 -> vector<1x256xf32>
    %265 = arith.select %263, %264, %25 : vector<1x256xi1>, vector<1x256xf32>
    %266 = arith.addf %141, %265 : vector<1x256xf32>
    %c21 = arith.constant 21 : index
    %267 = memref.load %arg1[%c21] : memref<98xf32, #tpu.memory_space<smem>>
    %268 = vector.broadcast %267 : f32 to vector<1x256xf32>
    %269 = arith.mulf %32, %268 : vector<1x256xf32>
    %c70 = arith.constant 70 : index
    %270 = memref.load %arg1[%c70] : memref<98xf32, #tpu.memory_space<smem>>
    %271 = vector.broadcast %270 : f32 to vector<1x256xf32>
    %272 = arith.mulf %34, %271 : vector<1x256xf32>
    %c22 = arith.constant 22 : index
    %273 = memref.load %arg1[%c22] : memref<98xf32, #tpu.memory_space<smem>>
    %274 = vector.broadcast %273 : f32 to vector<1x256xf32>
    %275 = arith.mulf %41, %274 : vector<1x256xf32>
    %276 = arith.addf %269, %275 : vector<1x256xf32>
    %c71 = arith.constant 71 : index
    %277 = memref.load %arg1[%c71] : memref<98xf32, #tpu.memory_space<smem>>
    %278 = vector.broadcast %277 : f32 to vector<1x256xf32>
    %279 = arith.mulf %43, %278 : vector<1x256xf32>
    %280 = arith.addf %272, %279 : vector<1x256xf32>
    %c23 = arith.constant 23 : index
    %281 = memref.load %arg1[%c23] : memref<98xf32, #tpu.memory_space<smem>>
    %282 = vector.broadcast %281 : f32 to vector<1x256xf32>
    %283 = arith.mulf %50, %282 : vector<1x256xf32>
    %284 = arith.addf %276, %283 : vector<1x256xf32>
    %c72 = arith.constant 72 : index
    %285 = memref.load %arg1[%c72] : memref<98xf32, #tpu.memory_space<smem>>
    %286 = vector.broadcast %285 : f32 to vector<1x256xf32>
    %287 = arith.mulf %52, %286 : vector<1x256xf32>
    %288 = arith.addf %280, %287 : vector<1x256xf32>
    %c24 = arith.constant 24 : index
    %289 = memref.load %arg1[%c24] : memref<98xf32, #tpu.memory_space<smem>>
    %290 = vector.broadcast %289 : f32 to vector<1x256xf32>
    %291 = arith.mulf %5, %290 : vector<1x256xf32>
    %292 = arith.addf %284, %291 : vector<1x256xf32>
    %c73 = arith.constant 73 : index
    %293 = memref.load %arg1[%c73] : memref<98xf32, #tpu.memory_space<smem>>
    %294 = vector.broadcast %293 : f32 to vector<1x256xf32>
    %295 = arith.mulf %7, %294 : vector<1x256xf32>
    %296 = arith.addf %288, %295 : vector<1x256xf32>
    %c25 = arith.constant 25 : index
    %297 = memref.load %arg1[%c25] : memref<98xf32, #tpu.memory_space<smem>>
    %298 = vector.broadcast %297 : f32 to vector<1x256xf32>
    %299 = arith.mulf %59, %298 : vector<1x256xf32>
    %300 = arith.addf %292, %299 : vector<1x256xf32>
    %c74 = arith.constant 74 : index
    %301 = memref.load %arg1[%c74] : memref<98xf32, #tpu.memory_space<smem>>
    %302 = vector.broadcast %301 : f32 to vector<1x256xf32>
    %303 = arith.mulf %61, %302 : vector<1x256xf32>
    %304 = arith.addf %296, %303 : vector<1x256xf32>
    %c26 = arith.constant 26 : index
    %305 = memref.load %arg1[%c26] : memref<98xf32, #tpu.memory_space<smem>>
    %306 = vector.broadcast %305 : f32 to vector<1x256xf32>
    %307 = arith.mulf %68, %306 : vector<1x256xf32>
    %308 = arith.addf %300, %307 : vector<1x256xf32>
    %c75 = arith.constant 75 : index
    %309 = memref.load %arg1[%c75] : memref<98xf32, #tpu.memory_space<smem>>
    %310 = vector.broadcast %309 : f32 to vector<1x256xf32>
    %311 = arith.mulf %70, %310 : vector<1x256xf32>
    %312 = arith.addf %304, %311 : vector<1x256xf32>
    %c27 = arith.constant 27 : index
    %313 = memref.load %arg1[%c27] : memref<98xf32, #tpu.memory_space<smem>>
    %314 = vector.broadcast %313 : f32 to vector<1x256xf32>
    %315 = arith.mulf %77, %314 : vector<1x256xf32>
    %316 = arith.addf %308, %315 : vector<1x256xf32>
    %c76 = arith.constant 76 : index
    %317 = memref.load %arg1[%c76] : memref<98xf32, #tpu.memory_space<smem>>
    %318 = vector.broadcast %317 : f32 to vector<1x256xf32>
    %319 = arith.mulf %79, %318 : vector<1x256xf32>
    %320 = arith.addf %312, %319 : vector<1x256xf32>
    %321 = arith.addf %316, %320 : vector<1x256xf32>
    %322 = arith.addf %203, %321 : vector<1x256xf32>
    %c28 = arith.constant 28 : index
    %323 = memref.load %arg1[%c28] : memref<98xf32, #tpu.memory_space<smem>>
    %324 = vector.broadcast %323 : f32 to vector<1x256xf32>
    %325 = arith.mulf %32, %324 : vector<1x256xf32>
    %c77 = arith.constant 77 : index
    %326 = memref.load %arg1[%c77] : memref<98xf32, #tpu.memory_space<smem>>
    %327 = vector.broadcast %326 : f32 to vector<1x256xf32>
    %328 = arith.mulf %34, %327 : vector<1x256xf32>
    %c29 = arith.constant 29 : index
    %329 = memref.load %arg1[%c29] : memref<98xf32, #tpu.memory_space<smem>>
    %330 = vector.broadcast %329 : f32 to vector<1x256xf32>
    %331 = arith.mulf %41, %330 : vector<1x256xf32>
    %332 = arith.addf %325, %331 : vector<1x256xf32>
    %c78 = arith.constant 78 : index
    %333 = memref.load %arg1[%c78] : memref<98xf32, #tpu.memory_space<smem>>
    %334 = vector.broadcast %333 : f32 to vector<1x256xf32>
    %335 = arith.mulf %43, %334 : vector<1x256xf32>
    %336 = arith.addf %328, %335 : vector<1x256xf32>
    %c30 = arith.constant 30 : index
    %337 = memref.load %arg1[%c30] : memref<98xf32, #tpu.memory_space<smem>>
    %338 = vector.broadcast %337 : f32 to vector<1x256xf32>
    %339 = arith.mulf %50, %338 : vector<1x256xf32>
    %340 = arith.addf %332, %339 : vector<1x256xf32>
    %c79 = arith.constant 79 : index
    %341 = memref.load %arg1[%c79] : memref<98xf32, #tpu.memory_space<smem>>
    %342 = vector.broadcast %341 : f32 to vector<1x256xf32>
    %343 = arith.mulf %52, %342 : vector<1x256xf32>
    %344 = arith.addf %336, %343 : vector<1x256xf32>
    %c31 = arith.constant 31 : index
    %345 = memref.load %arg1[%c31] : memref<98xf32, #tpu.memory_space<smem>>
    %346 = vector.broadcast %345 : f32 to vector<1x256xf32>
    %347 = arith.mulf %5, %346 : vector<1x256xf32>
    %348 = arith.addf %340, %347 : vector<1x256xf32>
    %c80 = arith.constant 80 : index
    %349 = memref.load %arg1[%c80] : memref<98xf32, #tpu.memory_space<smem>>
    %350 = vector.broadcast %349 : f32 to vector<1x256xf32>
    %351 = arith.mulf %7, %350 : vector<1x256xf32>
    %352 = arith.addf %344, %351 : vector<1x256xf32>
    %c32 = arith.constant 32 : index
    %353 = memref.load %arg1[%c32] : memref<98xf32, #tpu.memory_space<smem>>
    %354 = vector.broadcast %353 : f32 to vector<1x256xf32>
    %355 = arith.mulf %59, %354 : vector<1x256xf32>
    %356 = arith.addf %348, %355 : vector<1x256xf32>
    %c81 = arith.constant 81 : index
    %357 = memref.load %arg1[%c81] : memref<98xf32, #tpu.memory_space<smem>>
    %358 = vector.broadcast %357 : f32 to vector<1x256xf32>
    %359 = arith.mulf %61, %358 : vector<1x256xf32>
    %360 = arith.addf %352, %359 : vector<1x256xf32>
    %c33 = arith.constant 33 : index
    %361 = memref.load %arg1[%c33] : memref<98xf32, #tpu.memory_space<smem>>
    %362 = vector.broadcast %361 : f32 to vector<1x256xf32>
    %363 = arith.mulf %68, %362 : vector<1x256xf32>
    %364 = arith.addf %356, %363 : vector<1x256xf32>
    %c82 = arith.constant 82 : index
    %365 = memref.load %arg1[%c82] : memref<98xf32, #tpu.memory_space<smem>>
    %366 = vector.broadcast %365 : f32 to vector<1x256xf32>
    %367 = arith.mulf %70, %366 : vector<1x256xf32>
    %368 = arith.addf %360, %367 : vector<1x256xf32>
    %c34 = arith.constant 34 : index
    %369 = memref.load %arg1[%c34] : memref<98xf32, #tpu.memory_space<smem>>
    %370 = vector.broadcast %369 : f32 to vector<1x256xf32>
    %371 = arith.mulf %77, %370 : vector<1x256xf32>
    %372 = arith.addf %364, %371 : vector<1x256xf32>
    %c83 = arith.constant 83 : index
    %373 = memref.load %arg1[%c83] : memref<98xf32, #tpu.memory_space<smem>>
    %374 = vector.broadcast %373 : f32 to vector<1x256xf32>
    %375 = arith.mulf %79, %374 : vector<1x256xf32>
    %376 = arith.addf %368, %375 : vector<1x256xf32>
    %377 = arith.addf %372, %376 : vector<1x256xf32>
    %c-16_i32 = arith.constant -16 : i32
    %378 = vector.broadcast %c-16_i32 : i32 to vector<1x256xi32>
    %379 = arith.cmpi sge, %8, %378 : vector<1x256xi32>
    %c240_i32 = arith.constant 240 : i32
    %380 = vector.broadcast %c240_i32 : i32 to vector<1x256xi32>
    %381 = arith.cmpi slt, %8, %380 : vector<1x256xi32>
    %382 = arith.andi %379, %381 : vector<1x256xi1>
    %c240_i32_23 = arith.constant 240 : i32
    %383 = tpu.dynamic_rotate %377 by %c240_i32_23 dim 1 : vector<1x256xf32>, i32 -> vector<1x256xf32>
    %384 = arith.select %382, %383, %25 : vector<1x256xi1>, vector<1x256xf32>
    %385 = arith.addf %266, %384 : vector<1x256xf32>
    %c35 = arith.constant 35 : index
    %386 = memref.load %arg1[%c35] : memref<98xf32, #tpu.memory_space<smem>>
    %387 = vector.broadcast %386 : f32 to vector<1x256xf32>
    %388 = arith.mulf %32, %387 : vector<1x256xf32>
    %c84 = arith.constant 84 : index
    %389 = memref.load %arg1[%c84] : memref<98xf32, #tpu.memory_space<smem>>
    %390 = vector.broadcast %389 : f32 to vector<1x256xf32>
    %391 = arith.mulf %34, %390 : vector<1x256xf32>
    %c36 = arith.constant 36 : index
    %392 = memref.load %arg1[%c36] : memref<98xf32, #tpu.memory_space<smem>>
    %393 = vector.broadcast %392 : f32 to vector<1x256xf32>
    %394 = arith.mulf %41, %393 : vector<1x256xf32>
    %395 = arith.addf %388, %394 : vector<1x256xf32>
    %c85 = arith.constant 85 : index
    %396 = memref.load %arg1[%c85] : memref<98xf32, #tpu.memory_space<smem>>
    %397 = vector.broadcast %396 : f32 to vector<1x256xf32>
    %398 = arith.mulf %43, %397 : vector<1x256xf32>
    %399 = arith.addf %391, %398 : vector<1x256xf32>
    %c37 = arith.constant 37 : index
    %400 = memref.load %arg1[%c37] : memref<98xf32, #tpu.memory_space<smem>>
    %401 = vector.broadcast %400 : f32 to vector<1x256xf32>
    %402 = arith.mulf %50, %401 : vector<1x256xf32>
    %403 = arith.addf %395, %402 : vector<1x256xf32>
    %c86 = arith.constant 86 : index
    %404 = memref.load %arg1[%c86] : memref<98xf32, #tpu.memory_space<smem>>
    %405 = vector.broadcast %404 : f32 to vector<1x256xf32>
    %406 = arith.mulf %52, %405 : vector<1x256xf32>
    %407 = arith.addf %399, %406 : vector<1x256xf32>
    %c38 = arith.constant 38 : index
    %408 = memref.load %arg1[%c38] : memref<98xf32, #tpu.memory_space<smem>>
    %409 = vector.broadcast %408 : f32 to vector<1x256xf32>
    %410 = arith.mulf %5, %409 : vector<1x256xf32>
    %411 = arith.addf %403, %410 : vector<1x256xf32>
    %c87 = arith.constant 87 : index
    %412 = memref.load %arg1[%c87] : memref<98xf32, #tpu.memory_space<smem>>
    %413 = vector.broadcast %412 : f32 to vector<1x256xf32>
    %414 = arith.mulf %7, %413 : vector<1x256xf32>
    %415 = arith.addf %407, %414 : vector<1x256xf32>
    %c39 = arith.constant 39 : index
    %416 = memref.load %arg1[%c39] : memref<98xf32, #tpu.memory_space<smem>>
    %417 = vector.broadcast %416 : f32 to vector<1x256xf32>
    %418 = arith.mulf %59, %417 : vector<1x256xf32>
    %419 = arith.addf %411, %418 : vector<1x256xf32>
    %c88 = arith.constant 88 : index
    %420 = memref.load %arg1[%c88] : memref<98xf32, #tpu.memory_space<smem>>
    %421 = vector.broadcast %420 : f32 to vector<1x256xf32>
    %422 = arith.mulf %61, %421 : vector<1x256xf32>
    %423 = arith.addf %415, %422 : vector<1x256xf32>
    %c40 = arith.constant 40 : index
    %424 = memref.load %arg1[%c40] : memref<98xf32, #tpu.memory_space<smem>>
    %425 = vector.broadcast %424 : f32 to vector<1x256xf32>
    %426 = arith.mulf %68, %425 : vector<1x256xf32>
    %427 = arith.addf %419, %426 : vector<1x256xf32>
    %c89 = arith.constant 89 : index
    %428 = memref.load %arg1[%c89] : memref<98xf32, #tpu.memory_space<smem>>
    %429 = vector.broadcast %428 : f32 to vector<1x256xf32>
    %430 = arith.mulf %70, %429 : vector<1x256xf32>
    %431 = arith.addf %423, %430 : vector<1x256xf32>
    %c41 = arith.constant 41 : index
    %432 = memref.load %arg1[%c41] : memref<98xf32, #tpu.memory_space<smem>>
    %433 = vector.broadcast %432 : f32 to vector<1x256xf32>
    %434 = arith.mulf %77, %433 : vector<1x256xf32>
    %435 = arith.addf %427, %434 : vector<1x256xf32>
    %c90 = arith.constant 90 : index
    %436 = memref.load %arg1[%c90] : memref<98xf32, #tpu.memory_space<smem>>
    %437 = vector.broadcast %436 : f32 to vector<1x256xf32>
    %438 = arith.mulf %79, %437 : vector<1x256xf32>
    %439 = arith.addf %431, %438 : vector<1x256xf32>
    %440 = arith.addf %435, %439 : vector<1x256xf32>
    %c-32_i32 = arith.constant -32 : i32
    %441 = vector.broadcast %c-32_i32 : i32 to vector<1x256xi32>
    %442 = arith.cmpi sge, %8, %441 : vector<1x256xi32>
    %c224_i32 = arith.constant 224 : i32
    %443 = vector.broadcast %c224_i32 : i32 to vector<1x256xi32>
    %444 = arith.cmpi slt, %8, %443 : vector<1x256xi32>
    %445 = arith.andi %442, %444 : vector<1x256xi1>
    %c224_i32_24 = arith.constant 224 : i32
    %446 = tpu.dynamic_rotate %440 by %c224_i32_24 dim 1 : vector<1x256xf32>, i32 -> vector<1x256xf32>
    %447 = arith.select %445, %446, %25 : vector<1x256xi1>, vector<1x256xf32>
    %448 = arith.addf %322, %447 : vector<1x256xf32>
    %c42 = arith.constant 42 : index
    %449 = memref.load %arg1[%c42] : memref<98xf32, #tpu.memory_space<smem>>
    %450 = vector.broadcast %449 : f32 to vector<1x256xf32>
    %451 = arith.mulf %32, %450 : vector<1x256xf32>
    %c91 = arith.constant 91 : index
    %452 = memref.load %arg1[%c91] : memref<98xf32, #tpu.memory_space<smem>>
    %453 = vector.broadcast %452 : f32 to vector<1x256xf32>
    %454 = arith.mulf %34, %453 : vector<1x256xf32>
    %c43 = arith.constant 43 : index
    %455 = memref.load %arg1[%c43] : memref<98xf32, #tpu.memory_space<smem>>
    %456 = vector.broadcast %455 : f32 to vector<1x256xf32>
    %457 = arith.mulf %41, %456 : vector<1x256xf32>
    %458 = arith.addf %451, %457 : vector<1x256xf32>
    %c92 = arith.constant 92 : index
    %459 = memref.load %arg1[%c92] : memref<98xf32, #tpu.memory_space<smem>>
    %460 = vector.broadcast %459 : f32 to vector<1x256xf32>
    %461 = arith.mulf %43, %460 : vector<1x256xf32>
    %462 = arith.addf %454, %461 : vector<1x256xf32>
    %c44 = arith.constant 44 : index
    %463 = memref.load %arg1[%c44] : memref<98xf32, #tpu.memory_space<smem>>
    %464 = vector.broadcast %463 : f32 to vector<1x256xf32>
    %465 = arith.mulf %50, %464 : vector<1x256xf32>
    %466 = arith.addf %458, %465 : vector<1x256xf32>
    %c93 = arith.constant 93 : index
    %467 = memref.load %arg1[%c93] : memref<98xf32, #tpu.memory_space<smem>>
    %468 = vector.broadcast %467 : f32 to vector<1x256xf32>
    %469 = arith.mulf %52, %468 : vector<1x256xf32>
    %470 = arith.addf %462, %469 : vector<1x256xf32>
    %c45 = arith.constant 45 : index
    %471 = memref.load %arg1[%c45] : memref<98xf32, #tpu.memory_space<smem>>
    %472 = vector.broadcast %471 : f32 to vector<1x256xf32>
    %473 = arith.mulf %5, %472 : vector<1x256xf32>
    %474 = arith.addf %466, %473 : vector<1x256xf32>
    %c94 = arith.constant 94 : index
    %475 = memref.load %arg1[%c94] : memref<98xf32, #tpu.memory_space<smem>>
    %476 = vector.broadcast %475 : f32 to vector<1x256xf32>
    %477 = arith.mulf %7, %476 : vector<1x256xf32>
    %478 = arith.addf %470, %477 : vector<1x256xf32>
    %c46 = arith.constant 46 : index
    %479 = memref.load %arg1[%c46] : memref<98xf32, #tpu.memory_space<smem>>
    %480 = vector.broadcast %479 : f32 to vector<1x256xf32>
    %481 = arith.mulf %59, %480 : vector<1x256xf32>
    %482 = arith.addf %474, %481 : vector<1x256xf32>
    %c95 = arith.constant 95 : index
    %483 = memref.load %arg1[%c95] : memref<98xf32, #tpu.memory_space<smem>>
    %484 = vector.broadcast %483 : f32 to vector<1x256xf32>
    %485 = arith.mulf %61, %484 : vector<1x256xf32>
    %486 = arith.addf %478, %485 : vector<1x256xf32>
    %c47 = arith.constant 47 : index
    %487 = memref.load %arg1[%c47] : memref<98xf32, #tpu.memory_space<smem>>
    %488 = vector.broadcast %487 : f32 to vector<1x256xf32>
    %489 = arith.mulf %68, %488 : vector<1x256xf32>
    %490 = arith.addf %482, %489 : vector<1x256xf32>
    %c96 = arith.constant 96 : index
    %491 = memref.load %arg1[%c96] : memref<98xf32, #tpu.memory_space<smem>>
    %492 = vector.broadcast %491 : f32 to vector<1x256xf32>
    %493 = arith.mulf %70, %492 : vector<1x256xf32>
    %494 = arith.addf %486, %493 : vector<1x256xf32>
    %c48 = arith.constant 48 : index
    %495 = memref.load %arg1[%c48] : memref<98xf32, #tpu.memory_space<smem>>
    %496 = vector.broadcast %495 : f32 to vector<1x256xf32>
    %497 = arith.mulf %77, %496 : vector<1x256xf32>
    %498 = arith.addf %490, %497 : vector<1x256xf32>
    %c97 = arith.constant 97 : index
    %499 = memref.load %arg1[%c97] : memref<98xf32, #tpu.memory_space<smem>>
    %500 = vector.broadcast %499 : f32 to vector<1x256xf32>
    %501 = arith.mulf %79, %500 : vector<1x256xf32>
    %502 = arith.addf %494, %501 : vector<1x256xf32>
    %503 = arith.addf %498, %502 : vector<1x256xf32>
    %c-48_i32 = arith.constant -48 : i32
    %504 = vector.broadcast %c-48_i32 : i32 to vector<1x256xi32>
    %505 = arith.cmpi sge, %8, %504 : vector<1x256xi32>
    %c208_i32 = arith.constant 208 : i32
    %506 = vector.broadcast %c208_i32 : i32 to vector<1x256xi32>
    %507 = arith.cmpi slt, %8, %506 : vector<1x256xi32>
    %508 = arith.andi %505, %507 : vector<1x256xi1>
    %c208_i32_25 = arith.constant 208 : i32
    %509 = tpu.dynamic_rotate %503 by %c208_i32_25 dim 1 : vector<1x256xf32>, i32 -> vector<1x256xf32>
    %510 = arith.select %508, %509, %25 : vector<1x256xi1>, vector<1x256xf32>
    %511 = arith.addf %385, %510 : vector<1x256xf32>
    %512 = arith.addf %511, %448 : vector<1x256xf32>
    %513 = arith.negf %512 : vector<1x256xf32>
    %514 = math.exp %513 : vector<1x256xf32>
    %cst_26 = arith.constant 1.000000e+00 : f32
    %515 = vector.broadcast %cst_26 : f32 to vector<1x256xf32>
    %516 = arith.addf %515, %514 : vector<1x256xf32>
    %517 = arith.divf %515, %516 : vector<1x256xf32>
    %518 = vector.broadcast %517 : vector<1x256xf32> to vector<4x256xf32>
    %519 = arith.mulf %1, %518 : vector<4x256xf32>
    %c0_27 = arith.constant 0 : index
    %c0_28 = arith.constant 0 : index
    %c0_29 = arith.constant 0 : index
    %520 = vector.load %arg3[%c0_27, %c0_28, %c0_29] : memref<1x4x256xf32, #tpu.memory_space<vmem>>, vector<1x4x256xf32>
    %521 = vector.shape_cast %520 : vector<1x4x256xf32> to vector<4x256xf32>
    %522 = vector.shape_cast %519 : vector<4x256xf32> to vector<1x4x256xf32>
    tpu.vector_store %arg3[%c0_27, %c0_28, %c0_29], %522 {strides = array<i32>} : memref<1x4x256xf32, #tpu.memory_space<vmem>>, vector<1x4x256xf32>,
    return
  }
  func.func @transform_0(%arg0: i32) -> i32 {
    %c0_i32 = arith.constant 0 : i32
    %c0_i32_0 = arith.constant 0 : i32
    return %c0_i32 : i32
  }
  func.func @transform_1(%arg0: i32) -> (i32, i32, i32) {
    %c0_i32 = arith.constant 0 : i32
    %c0_i32_0 = arith.constant 0 : i32
    %c0_i32_1 = arith.constant 0 : i32
    return %arg0, %c0_i32, %c0_i32_0 : i32, i32, i32
  }
  func.func @transform_2(%arg0: i32) -> (i32, i32, i32) {
    %c0_i32 = arith.constant 0 : i32
    %c0_i32_0 = arith.constant 0 : i32
    %c0_i32_1 = arith.constant 0 : i32
    return %arg0, %c0_i32, %c0_i32_0 : i32, i32, i32
  }
}

</mosaic_0001>

<bundles_post_ra>
// kernel: spatial_attention.1
= control target key start
LH: loop header
LB: loop body
LE: loop exit
PB: predicated region body
PF: predicated region fallthrough
CT: control target
= control target key end

     0   :  { %s2698_s0 = inlined_call_operand.vmem [shape: f32[98], index: 0, kind: input, shape index: {}]   ;;  %s2699_s1 = inlined_call_operand.vmem [shape: f32[2,4,256], index: 1, kind: input, shape index: {}]   ;;  %s2700_s2 = inlined_call_operand.vmem [shape: f32[2,4,256], index: 2, kind: output, shape index: {}]  }
   0x1   :  { %2823 = sst [smem:[#allocation142_spill]] %s2698_s0 }
   0x2   :  { %2824 = sst [smem:[#allocation143_spill]] %s2699_s1 }
   0x3   :  { %2825 = sst [smem:[#allocation144_spill]] %s2700_s2 }
   0x4   :  { %7 = vsyncpa [#allocation3], 0  ;;  %s1338_s9 = smov 0  }
   0x5 LB: > { %2826 = sst [smem:[#allocation5_spill]] %s1308_s9  ;;  %s1128_s10 = sadd.s32 4294967295, %s1308_s9   ;;  %s1308_s9 = sphi %s1338_s9, %s13_s9  }
   0x6   : > { %p1130_p0 = scmp.ge.s32.totalorder %s1308_s9, 1  ;;  %p91_p1 = scmp.lt.s32.totalorder %s1308_s9, 3 }
   0x7   : > { %s2827_s0 = sld [smem:[#allocation142_spill]]  ;;  %p1250_p3 = scmp.eq.s32.totalorder %s1128_s10, 0 }
   0x8   : > { %p1349_p2 = pnand %p1130_p0, %p91_p1 }
   0xa   : > { %p1246_p4 = pneg %p1349_p2 }
   0xc   : > { %p1247_p5 = pnand %p1250_p3, %p1246_p4 }
   0xd   : > { %s104_s13 = sshll.u32 %s2827_s0, 4  ;;  %s105_s13 = int_to_ptr.vmem [resolvable:$true] %s104_s13 }
   0xe   : > { %s1283_s15 = scalar_lea.vmem %s105_s13, 16  ;;  %p1285_p7 = pneg %p1247_p5 }
   0xf   : > { %p1284_p6 = scmp.ne.s32.totalorder %s105_s13, %s1283_s15  ;;  %p1291_p10 = scmp.lt.s32.totalorder %s105_s13, %s105_s13 }
  0x10   : > { %p1292_p11 = scmp.lt.s32.totalorder %s1283_s15, %s1283_s15 }
  0x11   : > { %p1286_p8 = pnand %p1285_p7, %p1284_p6 }
  0x12   : > { %p1293_p12 = por %p1292_p11, %p1291_p10 }
  0x13   : > { %p1287_p9 = pneg %p1286_p8 }
  0x15   : > { %p1294_p13 = pnand %p1293_p12, %p1287_p9 }
  0x17   : > { %1297 = shalt.err (!%p1294_p13)
}
  0x18   : > { %s1310_s16 = smov [#allocation2]   ;;  %125 = sbr.rel (%p1349_p2) target bundleno = 459 (0x1cb), region = 28 }
  0x19   : > { %1249 = dma.vmem_to_smem (!%p1247_p5), %s105_s13, 16, %s1310_s16, [#allocation3]  }
  0x1f   : > { %1303 = dma.done.wait (%p1250_p3), [#allocation3], 16  }
  0x20   : > { %1305 = vsyncadd (%p1250_p3), [#allocation3], 4294967280 }
  0x21   : > { %131 = sfence }
  0x22   : > { %p148_p0 = scmp.lt.s32.totalorder %s1128_s10, 1  ;;  %vm162_vm0 = vcmask 1043456   ;;  %s2830_s1 = sld [smem:[#allocation143_spill]]  ;;  %v2779_v32 = vlaneseq }
  0x23   : > { %s1311_s21 = smov 2   ;;  %s1312_s22 = smov 3  }
  0x24   : > { %s3283_s10 = smov (!%p148_p0, %s1128_s10), 1  ;;  %s1313_s23 = smov 1   ;;  %v1468_v33 = vand.u32 127, %v2779_v32 }
  0x25   : > { %2829 = sst [smem:[#allocation6_spill]] %s3283_s10  ;;  %s2701_s17 = sshll.u32 %s3283_s10, 3 }
  0x26   : > { %s1314_s24 = smov 127   ;;  %s1315_s25 = smov 126   ;;  %v1487_v34 = vadd.s32 128, %v1468_v33  ;;  %v1506_v35 = vand.u32 15, %v1468_v33  ;;  %vm231_vm1 = vcmp.lt.s32.totalorder %v1468_v33, 3  ;;  %vm254_vm4 = vcmp.lt.s32.totalorder %v1468_v33, 2 }
  0x27   : > { %s1316_s26 = smov 125   ;;  %s1403_s27 = sld [smem:[#allocation2 + $0x31]]  ;;  %vm277_vm7 = vcmp.lt.s32.totalorder %v1468_v33, 1  ;;  %vm300_vm10 = vcmp.lt.s32.totalorder %v1468_v33, 127  ;;  %vm323_vm13 = vcmp.lt.s32.totalorder %v1468_v33, 126 }
  0x28   : > { %s1368_s20 = scalar_lea.vmem %s2830_s1, %s2701_s17  ;;  %s1405_s28 = sld [smem:[#allocation2 + $0x38]]  ;;  %2872 = vst [vmem:[#allocation48_spill] sm:$0xff] %v1487_v34  ;;  %v1509_v36 = vand.u32 15, %v1487_v34  ;;  %vm221_vm2 = vcmp.ge.s32.totalorder %v1506_v35, 3  ;;  %vm244_vm5 = vcmp.ge.s32.totalorder %v1506_v35, 2  ;;  %vm267_vm9 = vcmp.ge.s32.totalorder %v1506_v35, 1 }
  0x29   : > { %2831 = sst [smem:[#allocation7_spill]] %s1368_s20  ;;  %v158_v0 = vld [vmem:[%s1368_s20] sm:$0xff]  ;;  %s1407_s29 = sld [smem:[#allocation2 + $0x3f]]  ;;  %vm292_vm11 = vcmp.lt.s32.totalorder %v1506_v35, 15  ;;  %vm315_vm14 = vcmp.lt.s32.totalorder %v1506_v35, 14 }
  0x2a   : > { %v180_v1 = vsel %vm162_vm0, %v158_v0, -inf  ;;  %v160_v2 = vcombine.high %v158_v0, %v158_v0  ;;  %v163_v3 = vsel %vm162_vm0, %v158_v0, 0.0  ;;  %s1409_s30 = sld [smem:[#allocation2 + $0x46]]  ;;  %s1411_s3 = sld [smem:[#allocation2 + $0x4d]]  ;;  %vm222_vm3 = vcmp.ge.s32.totalorder %v1509_v36, 3 }
  0x2b   : > { %v181_v4 = vrot.slane %v180_v1, 4  ;;  %v164_v5 = vrot.slane %v163_v3, 4  ;;  %s1413_s4 = sld [smem:[#allocation2 + $0x54]]  ;;  %s1415_s5 = sld [smem:[#allocation2 + $0x5b]]  ;;  %vm245_vm6 = vcmp.ge.s32.totalorder %v1509_v36, 2  ;;  %vm268_vm8 = vcmp.ge.s32.totalorder %v1509_v36, 1 }
  0x2c   : > { %v187_v6 = vsel %vm162_vm0, %v160_v2, -inf  ;;  %v170_v7 = vsel %vm162_vm0, %v160_v2, 0.0  ;;  %s1417_s6 = sld [smem:[#allocation2 + $0x32]]  ;;  %s1419_s7 = sld [smem:[#allocation2 + $0x39]]  ;;  %vm293_vm12 = vcmp.lt.s32.totalorder %v1509_v36, 15  ;;  %vm316_vm15 = vcmp.lt.s32.totalorder %v1509_v36, 14 }
  0x2d   : > { %v182_v8 = vmax.f32 %v180_v1, %v181_v4  ;;  %v188_v9 = vrot.slane %v187_v6, 4  ;;  %v165_v10 = vadd.f32 %v164_v5, %v163_v3  ;;  %v171_v11 = vrot.slane %v170_v7, 4  ;;  %2832 = sst [smem:[#allocation8_spill]] %s1403_s27  ;;  %s1421_s8 = sld [smem:[#allocation2 + $0x40]] }
  0x2e   : > { %2833 = sst [smem:[#allocation9_spill]] %s1405_s28  ;;  %s1423_s11 = sld [smem:[#allocation2 + $0x47]]  ;;  %v364_v37 = vstv %s1403_s27  ;;  %v461_v38 = vstv %s1405_s28  ;;  %vm346_vm0 = vcmp.lt.s32.totalorder %v1468_v33, 125 }
  0x2f   : > { %v183_v12 = vrot.slane %v182_v8, 2  ;;  %v189_v13 = vmax.f32 %v187_v6, %v188_v9  ;;  %v166_v14 = vrot.slane %v165_v10, 2  ;;  %v172_v15 = vadd.f32 %v171_v11, %v170_v7  ;;  %2834 = sst [smem:[#allocation10_spill]] %s1407_s29  ;;  %s1425_s12 = sld [smem:[#allocation2 + $0x4e]] }
  0x30   : > { %2835 = sst [smem:[#allocation11_spill]] %s1409_s30  ;;  %s1427_s13 = sld [smem:[#allocation2 + $0x55]]  ;;  %v558_v39 = vstv %s1407_s29  ;;  %v657_v40 = vstv %s1409_s30  ;;  %v741_v41 = vstv %s1411_s3 }
  0x31   : > { %v184_v16 = vmax.f32 %v182_v8, %v183_v12  ;;  %v190_v17 = vrot.slane %v189_v13, 2  ;;  %v167_v18 = vadd.f32 %v166_v14, %v165_v10  ;;  %v173_v22 = vrot.slane %v172_v15, 2  ;;  %2836 = sst [smem:[#allocation12_spill]] %s1411_s3  ;;  %s1429_s14 = sld [smem:[#allocation2 + $0x5c]] }
  0x32   : > { %2837 = sst [smem:[#allocation13_spill]] %s1413_s4  ;;  %s1431_s15 = sld [smem:[#allocation2 + $0x33]]  ;;  %v840_v42 = vstv %s1413_s4  ;;  %v939_v43 = vstv %s1415_s5  ;;  %v374_v44 = vstv %s1417_s6  ;;  %v471_v45 = vstv %s1419_s7 }
  0x33   : > { %v185_v19 = vrot.slane %v184_v16, 1  ;;  %v191_v20 = vmax.f32 %v189_v13, %v190_v17  ;;  %v168_v21 = vrot.slane %v167_v18, 1  ;;  %v174_v27 = vadd.f32 %v173_v22, %v172_v15  ;;  %2838 = sst [smem:[#allocation14_spill]] %s1415_s5  ;;  %s1433_s16 = sld [smem:[#allocation2 + $0x3a]] }
  0x34   : > { %2839 = sst [smem:[#allocation15_spill]] %s1417_s6  ;;  %s1435_s18 = sld [smem:[#allocation2 + $0x41]]  ;;  %v568_v46 = vstv %s1421_s8  ;;  %v667_v47 = vstv %s1423_s11 }
  0x35   : > { %v1371_v23 = vmax.f32 %v184_v16, %v185_v19  ;;  %v192_v24 = vrot.slane %v191_v20, 1  ;;  %v169_v26 = vadd.f32 %v168_v21, %v167_v18  ;;  %v175_v29 = vrot.slane %v174_v27, 1  ;;  %2840 = sst [smem:[#allocation16_spill]] %s1419_s7  ;;  %s1437_s19 = sld [smem:[#allocation2 + $0x48]] }
  0x36   : > { %2841 = sst [smem:[#allocation17_spill]] %s1421_s8  ;;  %s1451_s17 = sld [smem:[#allocation2 + $0x16]] }
  0x37   : > { %259 = vrot.lane.b32.xlu0 %v1371_v23, %s1311_s21  ;;  %236 = vrot.lane.b32.xlu1 %v1371_v23, %s1312_s22  ;;  %v1375_v25 = vmax.f32 %v191_v20, %v192_v24  ;;  %v1379_v28 = vmul.f32 0.25, %v169_v26  ;;  %v176_v30 = vadd.f32 %v175_v29, %v174_v27  ;;  %2842 = sst [smem:[#allocation18_spill]] %s1423_s11  ;;  %s1455_s1 = sld [smem:[#allocation2 + $0x24]] }
  0x38   : > { %2843 = sst [smem:[#allocation19_spill]] %s1425_s12  ;;  %s1453_s0 = sld [smem:[#allocation2 + $0x1d]] }
  0x39   : > { %v1385_v31 = vmul.f32 0.25, %v176_v30  ;;  %2844 = sst [smem:[#allocation20_spill]] %s1427_s13  ;;  %s1457_s9 = sld [smem:[#allocation2 + $0x2b]] }
  0x3a   : > { %2845 = sst [smem:[#allocation21_spill]] %s1429_s14  ;;  %s1459_s2 = sld [smem:[#allocation2 + $0x2]] }
  0x3b   : > { %282 = vrot.lane.b32.xlu0 %v1371_v23, %s1313_s23  ;;  %238 = vrot.lane.b32.xlu1 %v1375_v25, %s1312_s22  ;;  %2846 = sst [smem:[#allocation22_spill]] %s1431_s15  ;;  %s1463_s10 = sld [smem:[#allocation2 + $0x10]] }
  0x3c   : > { %2847 = sst [smem:[#allocation23_spill]] %s1433_s16  ;;  %s1461_s20 = sld [smem:[#allocation2 + $0x9]] }
  0x3d   : > { %2848 = sst [smem:[#allocation24_spill]] %s1435_s18  ;;  %s1529_s28 = sld [smem:[#allocation2 + $0x11]] }
  0x3e   : > { %2849 = sst [smem:[#allocation25_spill]] %s1437_s19  ;;  %s1531_s30 = sld [smem:[#allocation2 + $0x12]] }
  0x3f   : > { %227 = vrot.lane.b32.xlu0 %v1379_v28, %s1312_s22  ;;  %261 = vrot.lane.b32.xlu1 %v1375_v25, %s1311_s21  ;;  %2856 = sst [smem:[#allocation32_spill]] %s1451_s17  ;;  %s1472_s17 = sld [smem:[#allocation2 + $0x25]] }
  0x40   : > { %2857 = sst [smem:[#allocation33_spill]] %s1453_s0  ;;  %s1537_s29 = sld [smem:[#allocation2 + $0x43]] }
  0x41   : > { %2858 = sst [smem:[#allocation34_spill]] %s1455_s1  ;;  %s1474_s0 = sld [smem:[#allocation2 + $0x2c]] }
  0x42   : > { %2859 = sst [smem:[#allocation35_spill]] %s1457_s9  ;;  %s1476_s1 = sld [smem:[#allocation2]] }
  0x43   : > { %250 = vrot.lane.b32.xlu0 %v1379_v28, %s1311_s21  ;;  %284 = vrot.lane.b32.xlu1 %v1375_v25, %s1313_s23  ;;  %2860 = sst [smem:[#allocation36_spill]] %s1459_s2  ;;  %s1539_s6 = sld [smem:[#allocation2 + $0x13]]  ;;  %v586_v29 = vstv %s1529_s28 }
  0x44   : > { %2861 = sst [smem:[#allocation37_spill]] %s1461_s20  ;;  %s1478_s9 = sld [smem:[#allocation2 + $0x7]]  ;;  %v1665_v13 = vmul.f32 %v586_v29, %v1385_v31 }
  0x45   : > { %2862 = sst [smem:[#allocation38_spill]] %s1463_s10  ;;  %s1480_s20 = sld [smem:[#allocation2 + $0xe]] }
  0x46   : > { %2865 = sst [smem:[#allocation41_spill]] %s1472_s17  ;;  %s1482_s10 = sld [smem:[#allocation2 + $0x15]] }
  0x47   : > { %273 = vrot.lane.b32.xlu0 %v1379_v28, %s1313_s23  ;;  %252 = vrot.lane.b32.xlu1 %v1385_v31, %s1311_s21  ;;  %s1439_s21 = sld [smem:[#allocation2 + $0x4f]]  ;;  %2866 = sst [smem:[#allocation42_spill]] %s1474_s0 }
  0x48   : > { %2867 = sst [smem:[#allocation43_spill]] %s1476_s1  ;;  %s1489_s17 = sld [smem:[#allocation2 + $0x23]] }
  0x49   : > { %s1491_s0 = sld [smem:[#allocation2 + $0x2a]]  ;;  %s1493_s1 = sld [smem:[#allocation2 + $0x34]] }
  0x4a   : > { %2868 = sst [smem:[#allocation44_spill]] %s1478_s9  ;;  %s1495_s9 = sld [smem:[#allocation2 + $0x4]] }
  0x4b   : > { %296 = vrot.lane.b32.xlu0 %v1379_v28, %s1314_s24  ;;  %275 = vrot.lane.b32.xlu1 %v1385_v31, %s1313_s23  ;;  %s1443_s23 = sld [smem:[#allocation2 + $0x5d]]  ;;  %2869 = sst [smem:[#allocation45_spill]] %s1480_s20 }
  0x4c   : > { %2870 = sst [smem:[#allocation46_spill]] %s1482_s10  ;;  %s1497_s20 = sld [smem:[#allocation2 + $0x3]] }
  0x4d   : > { %2850 = sst [smem:[#allocation26_spill]] %s1439_s21  ;;  %s1547_s12 = sld [smem:[#allocation2 + $0x14]] }
  0x4e   : > { %2873 = sst [smem:[#allocation49_spill]] %s1489_s17  ;;  %s1499_s10 = sld [smem:[#allocation2 + $0x35]] }
  0x4f   : > { %298 = vrot.lane.b32.xlu1 %v1385_v31, %s1314_s24  ;;  %229 = vrot.lane.b32.xlu0 %v1385_v31, %s1312_s22  ;;  %s1441_s22 = sld [smem:[#allocation2 + $0x56]]  ;;  %2874 = sst [smem:[#allocation50_spill]] %s1491_s0  ;;  %v398_v6 = vstv %s1493_s1 }
  0x50   : > { %2875 = sst [smem:[#allocation51_spill]] %s1495_s9  ;;  %s1513_s9 = sld [smem:[#allocation2 + $0x6]]  ;;  %v1600_v17 = vmul.f32 %v398_v6, %v1371_v23  ;;  %v1610_v21 = vmul.f32 %v398_v6, %v1375_v25 }
  0x51   : > { %2852 = sst [smem:[#allocation28_spill]] %s1443_s23  ;;  %s1555_s16 = sld [smem:[#allocation2 + $0x50]] }
  0x52   : > { %2881 = sst [smem:[#allocation57_spill]] %s1531_s30  ;;  %s1545_s30 = sld [smem:[#allocation2 + $0x44]]  ;;  %v392_v14 = vstv %s1497_s20 }
  0x53   : > { %307 = vrot.lane.b32.xlu1 %v1375_v25, %s1314_s24  ;;  %305 = vrot.lane.b32.xlu0 %v1371_v23, %s1314_s24  ;;  %s1445_s24 = sld [smem:[#allocation2 + $0x1]]  ;;  %2885 = sst [smem:[#allocation58_spill]] %s1539_s6  ;;  %v1618_v24 = vmul.f32 %v392_v14, %v1379_v28  ;;  %v1630_v32 = vmul.f32 %v392_v14, %v1385_v31  ;;  %v1652_v14 = vmul.f32 %v586_v29, %v1379_v28 }
  0x54   : > { %2876 = sst [smem:[#allocation52_spill]] %s1499_s10  ;;  %s1515_s10 = sld [smem:[#allocation2 + $0x42]] }
  0x55   : > { %2851 = sst [smem:[#allocation27_spill]] %s1441_s22  ;;  %s1553_s6 = sld [smem:[#allocation2 + $0x45]] }
  0x56   : > { %2879 = sst [smem:[#allocation55_spill]] %s1513_s9  ;;  %s2896_s19 = sld [smem:[#allocation41_spill]] }
  0x57   : > { %321 = vrot.lane.b32.xlu1 %v1385_v31, %s1315_s25  ;;  %319 = vrot.lane.b32.xlu0 %v1379_v28, %s1315_s25  ;;  %2890 = sst [smem:[#allocation60_spill]] %s1547_s12  ;;  %s2897_s18 = sld [smem:[#allocation42_spill]]  ;;  %v775_v6 = vstv %s1555_s16 }
  0x58   : > { %2889 = sst [smem:[#allocation59_spill]] %s1545_s30  ;;  %s1561_s12 = sld [smem:[#allocation2 + $0xa]]  ;;  %v1677_v16 = vmul.f32 %v775_v6, %v1371_v23  ;;  %v1708_v20 = vmul.f32 %v775_v6, %v1375_v25 }
  0x59   : > { %2853 = sst [smem:[#allocation29_spill]] %s1445_s24  ;;  %s1465_s24 = sld [smem:[#allocation2 + $0x17]] }
  0x5a   : > { %s1563_s22 = sld [smem:[#allocation2 + $0xb]]  ;;  %s1569_s30 = sld [smem:[#allocation2 + $0x3c]]  ;;  %v592_v18 = vstv %s1515_s10  ;;  %2920 = vst [vmem:[#allocation68_spill] sm:$0xff] %v1677_v16  ;;  %2923 = vst [vmem:[#allocation70_spill] sm:$0xff] %v1708_v20 }
  0x5b   : > { %330 = vrot.lane.b32.xlu1 %v1375_v25, %s1315_s25  ;;  %328 = vrot.lane.b32.xlu0 %v1371_v23, %s1315_s25  ;;  %s1447_s25 = sld [smem:[#allocation2 + $0x8]]  ;;  %2894 = sst [smem:[#allocation61_spill]] %s1553_s6  ;;  %v1633_v4 = vmul.f32 %v592_v18, %v1371_v23  ;;  %v1641_v27 = vmul.f32 %v592_v18, %v1375_v25 }
  0x5c   : > { %s1571_s4 = sld [smem:[#allocation2 + $0xc]]  ;;  %s1577_s7 = sld [smem:[#allocation2 + $0x3d]] }
  0x5d   : > { %s1579_s8 = sld [smem:[#allocation2 + $0xd]]  ;;  %s1585_s27 = sld [smem:[#allocation2 + $0x3e]] }
  0x5e   : > { %s1587_s5 = sld [smem:[#allocation2 + $0x57]]  ;;  %s1595_s14 = sld [smem:[#allocation2 + $0x20]]  ;;  %v489_v19 = vstv %s1561_s12 }
  0x5f   : > { %344 = vrot.lane.b32.xlu1 %v1385_v31, %s1316_s26  ;;  %342 = vrot.lane.b32.xlu0 %v1379_v28, %s1316_s26  ;;  %2863 = sst [smem:[#allocation39_spill]] %s1465_s24  ;;  %s1484_s24 = sld [smem:[#allocation2 + $0x1c]]  ;;  %v1687_v29 = vmul.f32 %v489_v19, %v1379_v28  ;;  %v1700_v9 = vmul.f32 %v489_v19, %v1385_v31 }
  0x60   : > { %2899 = sst [smem:[#allocation41_spill]] %s1563_s22  ;;  %s1593_s11 = sld [smem:[#allocation2 + $0x1f]] }
  0x61   : > { %2854 = sst [smem:[#allocation30_spill]] %s1447_s25  ;;  %s1613_s25 = sld [smem:[#allocation2 + $0x52]]  ;;  %2921 = vst [vmem:[#allocation69_spill] sm:$0xff] %v1700_v9 }
  0x62   : > { %2903 = sst [smem:[#allocation42_spill]] %s1569_s30  ;;  %s1603_s23 = sld [smem:[#allocation2 + $0x51]] }
  0x63   : > { %353 = vrot.lane.b32.xlu1 %v1375_v25, %s1316_s26  ;;  %351 = vrot.lane.b32.xlu0 %v1371_v23, %s1316_s26  ;;  %s1449_s26 = sld [smem:[#allocation2 + $0xf]]  ;;  %2905 = sst [smem:[#allocation62_spill]] %s1579_s8 }
  0x64   : > { %2908 = sst [smem:[#allocation63_spill]] %s1585_s27  ;;  %s1615_s0 = sld [smem:[#allocation2 + $0x22]]  ;;  %v874_v15 = vstv %s1587_s5 }
  0x65   : > { %2871 = sst [smem:[#allocation47_spill]] %s1484_s24  ;;  %s1501_s24 = sld [smem:[#allocation2 + $0x5]]  ;;  %v1711_v8 = vmul.f32 %v874_v15, %v1371_v23  ;;  %v1743_v5 = vmul.f32 %v874_v15, %v1375_v25 }
  0x66   : > { %2911 = sst [smem:[#allocation64_spill]] %s1595_s14  ;;  %s1605_s6 = sld [smem:[#allocation2 + $0x21]]  ;;  %v769_v26 = vstv %s1593_s11 }
  0x67   : > { %s1623_s10 = sld [smem:[#allocation2 + $0x53]]  ;;  %s2915_s2 = sld [smem:[#allocation58_spill]]  ;;  %2924 = vst [vmem:[#allocation71_spill] sm:$0xff] %v1711_v8  ;;  %v1719_v19 = vmul.f32 %v769_v26, %v1379_v28  ;;  %v1733_v3 = vmul.f32 %v769_v26, %v1385_v31  ;;  %2932 = vst [vmem:[#allocation78_spill] sm:$0xff] %v1743_v5 }
  0x68   : > { %s1625_s13 = sld [smem:[#allocation2 + $0x5e]]  ;;  %s1637_s15 = sld [smem:[#allocation2 + $0x27]] }
  0x69   : > { %2855 = sst [smem:[#allocation31_spill]] %s1449_s26  ;;  %s1470_s26 = sld [smem:[#allocation2 + $0x1e]]  ;;  %2927 = vst [vmem:[#allocation73_spill] sm:$0xff] %v1719_v19  ;;  %2929 = vst [vmem:[#allocation75_spill] sm:$0xff] %v1733_v3 }
  0x6a   : > { %2913 = sst [smem:[#allocation65_spill]] %s1615_s0  ;;  %s1635_s1 = sld [smem:[#allocation2 + $0x26]] }
  0x6b   : > { %2877 = sst [smem:[#allocation53_spill]] %s1501_s24  ;;  %s1523_s24 = sld [smem:[#allocation2 + $0x3b]] }
  0x6c   : > { %s1649_s9 = sld [smem:[#allocation2 + $0x28]]  ;;  %s1657_s20 = sld [smem:[#allocation2 + $0x59]] }
  0x6d   : > { %2914 = sst [smem:[#allocation66_spill]] %s1623_s10  ;;  %s1659_s3 = sld [smem:[#allocation2 + $0x2d]] }
  0x6e   : > { %s1667_s16 = sld [smem:[#allocation2 + $0x29]]  ;;  %s1669_s21 = sld [smem:[#allocation2 + $0x5a]]  ;;  %v973_v12 = vstv %s1625_s13 }
  0x6f   : > { %2864 = sst [smem:[#allocation40_spill]] %s1470_s26  ;;  %s1503_s26 = sld [smem:[#allocation2 + $0x36]]  ;;  %v1747_v6 = vmul.f32 %v973_v12, %v1371_v23  ;;  %v1765_v61 = vmul.f32 %v973_v12, %v1375_v25 }
  0x70   : > { %s1680_s12 = sld [smem:[#allocation2 + $0x2e]]  ;;  %s1682_s28 = sld [smem:[#allocation2 + $0x5f]]  ;;  %v868_v7 = vstv %s1635_s1 }
  0x71   : > { %v495_v22 = vstv %s1523_s24  ;;  %s2916_s24 = sld [smem:[#allocation59_spill]]  ;;  %s1692_s22 = sld [smem:[#allocation2 + $0x2f]]  ;;  %2933 = vst [vmem:[#allocation79_spill] sm:$0xff] %v1747_v6  ;;  %v1754_v2 = vmul.f32 %v868_v7, %v1379_v28  ;;  %v1762_v62 = vmul.f32 %v868_v7, %v1385_v31  ;;  %2938 = vst [vmem:[#allocation84_spill] sm:$0xff] %v1765_v61 }
  0x72   : > { %v1644_v30 = vmul.f32 %v495_v22, %v1371_v23  ;;  %v1674_v18 = vmul.f32 %v495_v22, %v1375_v25  ;;  %s1694_s5 = sld [smem:[#allocation2 + $0x49]]  ;;  %s1702_s17 = sld [smem:[#allocation2 + $0x60]] }
  0x73   : > { %s1704_s30 = sld [smem:[#allocation2 + $0x18]]  ;;  %s1716_s27 = sld [smem:[#allocation2 + $0x61]]  ;;  %v967_v26 = vstv %s1659_s3  ;;  %2936 = vst [vmem:[#allocation82_spill] sm:$0xff] %v1754_v2  ;;  %2937 = vst [vmem:[#allocation83_spill] sm:$0xff] %v1762_v62 }
  0x74   : > { %2919 = vst [vmem:[#allocation67_spill] sm:$0xff] %v1674_v18  ;;  %s1714_s11 = sld [smem:[#allocation2 + $0x30]]  ;;  %s1724_s14 = sld [smem:[#allocation2 + $0x19]]  ;;  %v1768_v60 = vmul.f32 %v967_v26, %v1379_v28  ;;  %v1777_v7 = vmul.f32 %v967_v26, %v1385_v31 }
  0x75   : > { %2878 = sst [smem:[#allocation54_spill]] %s1503_s26  ;;  %s1521_s26 = sld [smem:[#allocation2 + $0x37]] }
  0x76   : > { %s1726_s8 = sld [smem:[#allocation2 + $0x4a]]  ;;  %s1737_s1 = sld [smem:[#allocation2 + $0x4b]]  ;;  %2939 = vst [vmem:[#allocation85_spill] sm:$0xff] %v1768_v60  ;;  %2940 = vst [vmem:[#allocation86_spill] sm:$0xff] %v1777_v7 }
  0x77   : > { %s1735_s13 = sld [smem:[#allocation2 + $0x1a]]  ;;  %s1749_s10 = sld [smem:[#allocation2 + $0x1b]] }
  0x78   : > { %2922 = sst [smem:[#allocation58_spill]] %s1702_s17  ;;  %v691_v57 = vstv %s1694_s5  ;;  %s2966_s17 = sld [smem:[#allocation21_spill]] }
  0x79   : > { %2926 = sst [smem:[#allocation72_spill]] %s1716_s27  ;;  %s1751_s0 = sld [smem:[#allocation2 + $0x4c]]  ;;  %v685_v12 = vstv %s1704_s30 }
  0x7a   : > { %2925 = sst [smem:[#allocation59_spill]] %s1714_s11  ;;  %v1799_v15 = vmul.f32 %v685_v12, %v1379_v28  ;;  %s2961_s27 = sld [smem:[#allocation19_spill]] }
  0x7b   : > { %2880 = sst [smem:[#allocation56_spill]] %s1521_s26  ;;  %s1647_s26 = sld [smem:[#allocation2 + $0x58]] }
  0x7c   : > { %2928 = sst [smem:[#allocation74_spill]] %s1726_s8  ;;  %2946 = vst [vmem:[#allocation89_spill] sm:$0xff] %v1799_v15  ;;  %s2965_s11 = sld [smem:[#allocation20_spill]] }
  0x7d   : > { %2930 = sst [smem:[#allocation76_spill]] %s1735_s13  ;;  %s2968_s8 = sld [smem:[#allocation22_spill]] }
  0x7e   : > { %2931 = sst [smem:[#allocation77_spill]] %s1737_s1  ;;  %s2978_s5 = sld [smem:[#allocation25_spill]] }
  0x7f   : > { %2934 = sst [smem:[#allocation80_spill]] %s1749_s10  ;;  %s2974_s10 = sld [smem:[#allocation23_spill]] }
  0x80   : > { %2935 = sst [smem:[#allocation81_spill]] %s1751_s0  ;;  %s2976_s0 = sld [smem:[#allocation24_spill]] }
  0x81   : > { %s2980_s3 = sld [smem:[#allocation26_spill]]  ;;  %s2989_s30 = sld [smem:[#allocation27_spill]] }
  0x82   : > { %v2979_v15 = vstv %s2965_s11  ;;  %s3000_s11 = sld [smem:[#allocation29_spill]]  ;;  %s3028_s13 = sld [smem:[#allocation38_spill]] }
  0x83   : > { %v2988_v61 = vstv %s2968_s8  ;;  %s3004_s8 = sld [smem:[#allocation31_spill]]  ;;  %s3027_s1 = sld [smem:[#allocation37_spill]] }
  0xa9   : > { %v260_v11 = vpop.permute.xlu0 %259  ;;  %v237_v10 = vpop.permute.xlu1 %236 }
  0xad   : > { %v283_v1 = vpop.permute.xlu0 %282  ;;  %v239_v22 = vpop.permute.xlu1 %238 }
  0xae   : > { %v240_v0 = vsel %vm231_vm1, %v237_v10, %v239_v22  ;;  %v241_v59 = vsel %vm231_vm1, %v239_v22, %v237_v10  ;;  %v1793_v10 = vmul.f32 %v691_v57, %v1371_v23  ;;  %v1796_v22 = vmul.f32 %v691_v57, %v1375_v25 }
  0xaf   : > { %v242_v26 = vsel %vm221_vm2, %v241_v59, 0.0  ;;  %v243_v63 = vsel %vm222_vm3, %v240_v0, 0.0  ;;  %v1802_v59 = vmul.f32 %v685_v12, %v1385_v31 }
  0xb0   : > { %2943 = vst [vmem:[#allocation87_spill] sm:$0xff] %v1793_v10  ;;  %2945 = vst [vmem:[#allocation88_spill] sm:$0xff] %v1796_v22  ;;  %v365_v28 = vmul.f32 %v364_v37, %v242_v26  ;;  %v366_v31 = vmul.f32 %v364_v37, %v243_v63  ;;  %v1818_v12 = vmul.f32 %v461_v38, %v242_v26  ;;  %v2971_v22 = vstv %s2961_s27  ;;  %s2993_s27 = sld [smem:[#allocation28_spill]] }
  0xb1   : > { %2947 = vst [vmem:[#allocation90_spill] sm:$0xff] %v1802_v59  ;;  %v1806_v56 = vpop.permute.xlu0 %227  ;;  %v262_v55 = vpop.permute.xlu1 %261  ;;  %v1822_v0 = vmul.f32 %v461_v38, %v243_v63  ;;  %v1826_v23 = vmul.f32 %v558_v39, %v242_v26  ;;  %v1830_v25 = vmul.f32 %v558_v39, %v243_v63  ;;  %v658_v38 = vmul.f32 %v657_v40, %v242_v26 }
  0xb2   : > { %v263_v57 = vsel %vm254_vm4, %v260_v11, %v262_v55  ;;  %v264_v37 = vsel %vm254_vm4, %v262_v55, %v260_v11  ;;  %v1840_v54 = vmul.f32 %v657_v40, %v243_v63  ;;  %v1848_v53 = vmul.f32 %v741_v41, %v242_v26 }
  0xb3   : > { %2952 = vst [vmem:[#allocation91_spill] sm:$0xff] %v1822_v0  ;;  %v265_v39 = vsel %vm244_vm5, %v264_v37, 0.0  ;;  %v266_v58 = vsel %vm245_vm6, %v263_v57, 0.0  ;;  %v1852_v55 = vmul.f32 %v741_v41, %v243_v63  ;;  %v1856_v11 = vmul.f32 %v840_v42, %v242_v26 }
  0xb4   : > { %2956 = vst [vmem:[#allocation92_spill] sm:$0xff] %v1840_v54  ;;  %2958 = vst [vmem:[#allocation93_spill] sm:$0xff] %v1848_v53  ;;  %v1860_v40 = vmul.f32 %v840_v42, %v243_v63  ;;  %v1864_v51 = vmul.f32 %v939_v43, %v242_v26  ;;  %v1868_v57 = vmul.f32 %v939_v43, %v243_v63  ;;  %v2973_v59 = vmov %v2971_v22 }
  0xb5   : > { %2959 = vst [vmem:[#allocation94_spill] sm:$0xff] %v1852_v55  ;;  %2960 = vst [vmem:[#allocation95_spill] sm:$0xff] %v1856_v11  ;;  %v251_v37 = vpop.permute.xlu0 %250  ;;  %v285_v52 = vpop.permute.xlu1 %284  ;;  %v375_v50 = vmul.f32 %v374_v44, %v265_v39  ;;  %v668_v41 = vmul.f32 %v667_v47, %v265_v39  ;;  %v376_v49 = vmul.f32 %v374_v44, %v266_v58 }
  0xb6   : > { %2962 = vst [vmem:[#allocation96_spill] sm:$0xff] %v1860_v40  ;;  %2963 = vst [vmem:[#allocation97_spill] sm:$0xff] %v1864_v51  ;;  %v1878_v42 = vmul.f32 %v471_v45, %v265_v39  ;;  %v1882_v48 = vmul.f32 %v471_v45, %v266_v58  ;;  %v1886_v26 = vmul.f32 %v568_v46, %v265_v39 }
  0xb7   : > { %2964 = vst [vmem:[#allocation98_spill] sm:$0xff] %v1868_v57  ;;  %v1890_v43 = vmul.f32 %v568_v46, %v266_v58  ;;  %v1894_v63 = vmul.f32 %v667_v47, %v266_v58  ;;  %v1896_v34 = vadd.f32 %v668_v41, %v658_v38  ;;  %v286_v44 = vsel %vm277_vm7, %v283_v1, %v285_v52 }
  0xb8   : > { %2967 = vst [vmem:[#allocation99_spill] sm:$0xff] %v1882_v48  ;;  %v1902_v45 = vmul.f32 %v2971_v22, %v265_v39  ;;  %v1906_v10 = vmul.f32 %v2973_v59, %v266_v58  ;;  %v287_v46 = vsel %vm277_vm7, %v285_v52, %v283_v1  ;;  %v1912_v47 = vsel %vm268_vm8, %v286_v44, 0.0 }
  0xb9   : > { %2969 = vst [vmem:[#allocation100_spill] sm:$0xff] %v1894_v63  ;;  %2970 = vst [vmem:[#allocation101_spill] sm:$0xff] %v1896_v34  ;;  %v274_v38 = vpop.permute.xlu0 %273  ;;  %v253_v41 = vpop.permute.xlu1 %252  ;;  %v1916_v22 = vmul.f32 %v2979_v15, %v265_v39  ;;  %v2982_v34 = vmov %v2979_v15  ;;  %v2984_v63 = vstv %s2966_s17  ;;  %v288_v52 = vsel %vm267_vm9, %v287_v46, 0.0  ;;  %s3002_s17 = sld [smem:[#allocation30_spill]] }
  0xba   : > { %2972 = vst [vmem:[#allocation102_spill] sm:$0xff] %v1902_v45  ;;  %2975 = vst [vmem:[#allocation103_spill] sm:$0xff] %v1906_v10  ;;  %v1920_v59 = vmul.f32 %v2982_v34, %v266_v58  ;;  %v1924_v54 = vmul.f32 %v2984_v63, %v265_v39  ;;  %v2986_v1 = vmov %v2984_v63  ;;  %v1935_v7 = vmul.f32 %v2988_v61, %v1912_v47 }
  0xbb   : > { %2977 = vst [vmem:[#allocation104_spill] sm:$0xff] %v1912_v47  ;;  %2981 = vst [vmem:[#allocation105_spill] sm:$0xff] %v1916_v22  ;;  %v1930_v44 = vmul.f32 %v2986_v1, %v266_v58  ;;  %v1938_v15 = vadd.f32 %v375_v50, %v365_v28  ;;  %v1940_v34 = vadd.f32 %v376_v49, %v366_v31  ;;  %v2990_v39 = vmov %v2988_v61 }
  0xbc   : > { %2983 = vst [vmem:[#allocation106_spill] sm:$0xff] %v1920_v59  ;;  %2985 = vst [vmem:[#allocation107_spill] sm:$0xff] %v1924_v54  ;;  %v1944_v63 = vmul.f32 %v2990_v39, %v288_v52  ;;  %v2991_v57 = vstv %s2974_s10  ;;  %v2995_v61 = vstv %s2976_s0  ;;  %v2997_v49 = vstv %s2978_s5  ;;  %s3009_s10 = sld [smem:[#allocation32_spill]]  ;;  %s3011_s0 = sld [smem:[#allocation33_spill]] }
  0xbd   : > { %2987 = vst [vmem:[#allocation108_spill] sm:$0xff] %v1930_v44  ;;  %v1948_v46 = vmul.f32 %v2991_v57, %v288_v52  ;;  %v2992_v58 = vmov %v2991_v57  ;;  %v1958_v44 = vmul.f32 %v2995_v61, %v1912_v47  ;;  %v2996_v50 = vmov %v2995_v61  ;;  %v297_v6 = vpop.permute.xlu0 %296  ;;  %v276_v60 = vpop.permute.xlu1 %275 }
  0xbe   : > { %v1953_v1 = vmul.f32 %v2992_v58, %v1912_v47  ;;  %v1962_v28 = vmul.f32 %v2996_v50, %v288_v52  ;;  %v1966_v31 = vmul.f32 %v2997_v49, %v288_v52  ;;  %v2999_v39 = vstv %s2980_s3  ;;  %s3016_s3 = sld [smem:[#allocation34_spill]] }
  0xbf   : > { %v1970_v57 = vmul.f32 %v2999_v39, %v288_v52  ;;  %v255_v58 = vsel %vm254_vm4, %v251_v37, %v253_v41  ;;  %v3003_v61 = vmov %v2999_v39  ;;  %v3006_v49 = vstv %s2989_s30  ;;  %s3020_s30 = sld [smem:[#allocation35_spill]] }
  0xc0   : > { %2994 = vst [vmem:[#allocation109_spill] sm:$0xff] %v1953_v1  ;;  %2998 = vst [vmem:[#allocation110_spill] sm:$0xff] %v1966_v31  ;;  %v1978_v50 = vmul.f32 %v3003_v61, %v1912_v47  ;;  %v1982_v31 = vmul.f32 %v3006_v49, %v288_v52  ;;  %v256_v39 = vsel %vm254_vm4, %v253_v41, %v251_v37  ;;  %v1988_v54 = vsel %vm245_vm6, %v255_v58, 0.0 }
  0xc1   : > { %3001 = vst [vmem:[#allocation111_spill] sm:$0xff] %v1970_v57  ;;  %3008 = vst [vmem:[#allocation114_spill] sm:$0xff] %v1988_v54  ;;  %v3010_v51 = vmov %v3006_v49  ;;  %v3013_v61 = vstv %s2993_s27  ;;  %v257_v49 = vsel %vm244_vm5, %v256_v39, 0.0  ;;  %v279_v37 = vsel %vm277_vm7, %v276_v60, %v274_v38  ;;  %s3026_s27 = sld [smem:[#allocation36_spill]]  ;;  %v230_v2 = vpop.permute.xlu0 %229 }
  0xc2   : > { %3005 = vst [vmem:[#allocation112_spill] sm:$0xff] %v1978_v50  ;;  %3007 = vst [vmem:[#allocation113_spill] sm:$0xff] %v1982_v31  ;;  %v1994_v5 = vmul.f32 %v3010_v51, %v1912_v47  ;;  %v1998_v62 = vmul.f32 %v3013_v61, %v288_v52  ;;  %v3015_v41 = vmov %v3013_v61  ;;  %v3018_v59 = vstv %s3000_s11  ;;  %s3034_s11 = sld [smem:[#allocation40_spill]] }
  0xc3   : > { %v2007_v58 = vmul.f32 %v3015_v41, %v1912_v47  ;;  %v2012_v51 = vmul.f32 %v3018_v59, %v1988_v54  ;;  %v278_v39 = vsel %vm277_vm7, %v274_v38, %v276_v60  ;;  %v3022_v61 = vmov %v3018_v59 }
  0xc4   : > { %3012 = vst [vmem:[#allocation115_spill] sm:$0xff] %v1994_v5  ;;  %3014 = vst [vmem:[#allocation116_spill] sm:$0xff] %v1998_v62  ;;  %v3019_v5 = vstv %s3002_s17  ;;  %v2023_v62 = vmul.f32 %v3022_v61, %v257_v49  ;;  %v3024_v41 = vstv %s3004_s8  ;;  %v3029_v60 = vstv %s3009_s10  ;;  %s3057_s17 = sld [smem:[#allocation43_spill]]  ;;  %s3068_s8 = sld [smem:[#allocation47_spill]] }
  0xc5   : > { %3017 = vst [vmem:[#allocation117_spill] sm:$0xff] %v2007_v58  ;;  %v2017_v52 = vmul.f32 %v3019_v5, %v1988_v54  ;;  %v3023_v40 = vmov %v3019_v5  ;;  %v2031_v47 = vmul.f32 %v3024_v41, %v257_v49  ;;  %v3025_v59 = vmov %v3024_v41  ;;  %v299_v5 = vpop.permute.xlu1 %298 }
  0xc6   : > { %v2027_v8 = vmul.f32 %v3023_v40, %v257_v49  ;;  %v2036_v58 = vmul.f32 %v3025_v59, %v1988_v54  ;;  %v662_v38 = vmul.f32 %v3029_v60, %v257_v49  ;;  %v3030_v61 = vstv %s3011_s0  ;;  %s3090_s0 = sld [smem:[#allocation51_spill]] }
  0xc7   : > { %3021 = vst [vmem:[#allocation118_spill] sm:$0xff] %v2017_v52  ;;  %v2042_v40 = vmul.f32 %v3030_v61, %v257_v49  ;;  %v3032_v31 = vmov %v3030_v61  ;;  %v2051_v59 = vsel %vm267_vm9, %v279_v37, 0.0  ;;  %v3036_v22 = vstv %s3016_s3  ;;  %s3091_s3 = sld [smem:[#allocation52_spill]] }
  0xc8   : > { %v2047_v41 = vmul.f32 %v3032_v31, %v1988_v54  ;;  %3035 = vst [vmem:[#allocation121_spill] sm:$0xff] %v2051_v59  ;;  %v2056_v11 = vmul.f32 %v3036_v22, %v257_v49  ;;  %v3038_v60 = vmov %v3036_v22  ;;  %v3040_v20 = vstv %s3020_s30  ;;  %s3092_s30 = sld [smem:[#allocation53_spill]] }
  0xc9   : > { %3031 = vst [vmem:[#allocation119_spill] sm:$0xff] %v2042_v40  ;;  %v2061_v61 = vmul.f32 %v3038_v60, %v1988_v54  ;;  %v2065_v3 = vmul.f32 %v3040_v20, %v257_v49  ;;  %v2069_v31 = vsel %vm268_vm8, %v278_v39, 0.0  ;;  %v3043_v22 = vmov %v3040_v20  ;;  %v308_v55 = vpop.permute.xlu1 %307 }
  0xca   : > { %3033 = vst [vmem:[#allocation120_spill] sm:$0xff] %v2047_v41  ;;  %3037 = vst [vmem:[#allocation122_spill] sm:$0xff] %v2056_v11  ;;  %v2076_v37 = vmul.f32 %v3043_v22, %v1988_v54  ;;  %v3045_v60 = vstv %s3026_s27  ;;  %v3046_v20 = vstv %s3027_s1  ;;  %v3061_v57 = vstv %s2897_s18  ;;  %s3066_s1 = sld [smem:[#allocation46_spill]]  ;;  %s3070_s18 = sld [smem:[#allocation49_spill]] }
  0xcb   : > { %3039 = vst [vmem:[#allocation123_spill] sm:$0xff] %v2061_v61  ;;  %3041 = vst [vmem:[#allocation124_spill] sm:$0xff] %v2065_v3  ;;  %v381_v61 = vmul.f32 %v3045_v60, %v2051_v59  ;;  %v2084_v49 = vmul.f32 %v3046_v20, %v2051_v59  ;;  %v3047_v3 = vstv %s3028_s13  ;;  %v3048_v11 = vmov %v3045_v60  ;;  %s3063_s13 = sld [smem:[#allocation44_spill]]  ;;  %s3093_s27 = sld [smem:[#allocation54_spill]] }
  0xcc   : > { %3042 = vst [vmem:[#allocation125_spill] sm:$0xff] %v2069_v31  ;;  %3044 = vst [vmem:[#allocation126_spill] sm:$0xff] %v2076_v37  ;;  %v2089_v39 = vmul.f32 %v3047_v3, %v2051_v59  ;;  %v2094_v50 = vmul.f32 %v3048_v11, %v2069_v31  ;;  %v3049_v10 = vmov %v3046_v20  ;;  %v3051_v54 = vmov %v3047_v3  ;;  %v306_v3 = vpop.permute.xlu0 %305 }
  0xcd   : > { %v2099_v22 = vmul.f32 %v3049_v10, %v2069_v31  ;;  %v2104_v60 = vmul.f32 %v3051_v54, %v2069_v31  ;;  %v3052_v20 = vstv %s3034_s11  ;;  %v3056_v11 = vstv %s2896_s19  ;;  %s3064_s19 = sld [smem:[#allocation45_spill]]  ;;  %s3098_s11 = sld [smem:[#allocation55_spill]] }
  0xce   : > { %v2109_v37 = vmul.f32 %v3052_v20, %v2051_v59  ;;  %v3054_v41 = vmov %v3052_v20  ;;  %v2119_v19 = vmul.f32 %v3056_v11, %v2051_v59  ;;  %v3059_v10 = vmov %v3056_v11 }
  0xcf   : > { %3050 = vst [vmem:[#allocation127_spill] sm:$0xff] %v2099_v22  ;;  %v2114_v16 = vmul.f32 %v3054_v41, %v2069_v31  ;;  %v2124_v54 = vmul.f32 %v3059_v10, %v2069_v31  ;;  %v301_v20 = vsel %vm300_vm10, %v297_v6, %v299_v5  ;;  %v302_v41 = vsel %vm300_vm10, %v299_v5, %v297_v6 }
  0xd0   : > { %3053 = vst [vmem:[#allocation128_spill] sm:$0xff] %v2109_v37  ;;  %3058 = vst [vmem:[#allocation130_spill] sm:$0xff] %v2119_v19  ;;  %v2131_v37 = vmul.f32 %v3061_v57, %v2051_v59  ;;  %v232_v11 = vsel %vm231_vm1, %v1806_v56, %v230_v2  ;;  %v233_v10 = vsel %vm231_vm1, %v230_v2, %v1806_v56  ;;  %v2149_v6 = vsel %vm292_vm11, %v301_v20, 0.0  ;;  %v322_v59 = vpop.permute.xlu1 %321 }
  0xd1   : > { %3055 = vst [vmem:[#allocation129_spill] sm:$0xff] %v2114_v16  ;;  %3060 = vst [vmem:[#allocation131_spill] sm:$0xff] %v2124_v54  ;;  %v3065_v54 = vmov %v3061_v57  ;;  %v2153_v5 = vsel %vm221_vm2, %v233_v10, 0.0  ;;  %v2157_v56 = vsel %vm222_vm3, %v232_v11, 0.0  ;;  %vm338_vm1 = vcmp.lt.s32.totalorder %v1506_v35, 13 }
  0xd2   : > { %3062 = vst [vmem:[#allocation132_spill] sm:$0xff] %v2131_v37  ;;  %v2145_v57 = vmul.f32 %v3065_v54, %v2069_v31  ;;  %3069 = vst [vmem:[#allocation134_spill] sm:$0xff] %v2157_v56  ;;  %vm339_vm4 = vcmp.lt.s32.totalorder %v1509_v36, 13  ;;  %v2163_v2 = vsel %vm293_vm12, %v302_v41, 0.0  ;;  %v3071_v54 = vstv %s3057_s17  ;;  %s3103_s17 = sld [smem:[#allocation56_spill]] }
  0xd3   : > { %v361_v20 = vmul.f32 %v3071_v54, %v2153_v5  ;;  %v3072_v10 = vmov %v3071_v54  ;;  %v309_v11 = vsel %vm300_vm10, %v306_v3, %v308_v55  ;;  %v3073_v37 = vstv %s3063_s13  ;;  %s3104_s13 = sld [smem:[#allocation50_spill]] }
  0xd4   : > { %3067 = vst [vmem:[#allocation133_spill] sm:$0xff] %v2145_v57  ;;  %v362_v31 = vmul.f32 %v3072_v10, %v2157_v56  ;;  %v320_v57 = vpop.permute.xlu0 %319  ;;  %v2176_v19 = vmul.f32 %v3073_v37, %v2153_v5  ;;  %v3074_v16 = vmov %v3073_v37  ;;  %v3076_v45 = vstv %s3064_s19  ;;  %s3107_s19 = sld [smem:[#allocation57_spill]] }
  0xd5   : > { %v2181_v41 = vmul.f32 %v3074_v16, %v2157_v56  ;;  %v555_v53 = vmul.f32 %v3076_v45, %v2153_v5  ;;  %v3077_v54 = vstv %s3066_s1  ;;  %v3078_v10 = vmov %v3076_v45  ;;  %s3111_s1 = sld [smem:[#allocation60_spill]] }
  0xd6   : > { %v654_v40 = vmul.f32 %v3077_v54, %v2153_v5  ;;  %v2192_v18 = vmul.f32 %v3078_v10, %v2157_v56  ;;  %v3079_v9 = vmov %v3077_v54  ;;  %v3081_v37 = vstv %s3068_s8  ;;  %s3113_s8 = sld [smem:[#allocation61_spill]] }
  0xd7   : > { %3075 = vst [vmem:[#allocation135_spill] sm:$0xff] %v2181_v41  ;;  %v2197_v1 = vmul.f32 %v3079_v9, %v2157_v56  ;;  %v2202_v22 = vmul.f32 %v3081_v37, %v2153_v5  ;;  %v3083_v16 = vmov %v3081_v37  ;;  %v3086_v54 = vstv %s3070_s18  ;;  %s1317_s18 = smov 48  }
  0xd8   : > { %v2207_v48 = vmul.f32 %v3083_v16, %v2157_v56  ;;  %v2209_v45 = vadd.f32 %v662_v38, %v654_v40  ;;  %v2214_v0 = vmul.f32 %v3086_v54, %v2153_v5  ;;  %v3088_v10 = vmov %v3086_v54  ;;  %v331_v54 = vpop.permute.xlu1 %330 }
  0xd9   : > { %3080 = vst [vmem:[#allocation136_spill] sm:$0xff] %v2197_v1  ;;  %3082 = vst [vmem:[#allocation137_spill] sm:$0xff] %v2202_v22  ;;  %v2219_v52 = vmul.f32 %v3088_v10, %v2157_v56  ;;  %v310_v9 = vsel %vm300_vm10, %v308_v55, %v306_v3  ;;  %v2225_v37 = vsel %vm292_vm11, %v309_v11, 0.0  ;;  %v324_v40 = vsel %vm323_vm13, %v320_v57, %v322_v59  ;;  %v329_v10 = vpop.permute.xlu0 %328 }
  0xda   : > { %3084 = vst [vmem:[#allocation138_spill] sm:$0xff] %v2207_v48  ;;  %3085 = vst [vmem:[#allocation139_spill] sm:$0xff] %v2209_v45  ;;  %v2229_v38 = vsel %vm293_vm12, %v310_v9, 0.0  ;;  %v325_v16 = vsel %vm323_vm13, %v322_v59, %v320_v57  ;;  %v2237_v55 = vsel %vm315_vm14, %v324_v40, 0.0  ;;  %v332_v11 = vsel %vm323_vm13, %v329_v10, %v331_v54 }
  0xdb   : > { %3087 = vst [vmem:[#allocation140_spill] sm:$0xff] %v2214_v0  ;;  %3089 = vst [vmem:[#allocation141_spill] sm:$0xff] %v2219_v52  ;;  %v2241_v3 = vsel %vm316_vm15, %v325_v16, 0.0  ;;  %v333_v9 = vsel %vm323_vm13, %v331_v54, %v329_v10  ;;  %v2249_v45 = vsel %vm315_vm14, %v332_v11, 0.0  ;;  %v371_v57 = vadd.f32 %v2023_v62, %v361_v20 }
  0xdc   : > { %v2253_v59 = vsel %vm316_vm15, %v333_v9, 0.0  ;;  %v389_v40 = vadd.f32 %v1944_v63, %v1938_v15  ;;  %v3094_v16 = vstv %s3090_s0  ;;  %v3095_v54 = vstv %s3091_s3  ;;  %v345_v0 = vpop.permute.xlu1 %344 }
  0xdd   : > { %v405_v1 = vmul.f32 %v3094_v16, %v2149_v6  ;;  %v411_v10 = vmul.f32 %v3095_v54, %v2225_v37  ;;  %v3096_v11 = vstv %s3092_s30  ;;  %v3097_v52 = vstv %s3093_s27  ;;  %v343_v48 = vpop.permute.xlu0 %342 }
  0xde   : > { %v417_v56 = vmul.f32 %v3096_v11, %v2237_v55  ;;  %v423_v9 = vmul.f32 %v3097_v52, %v2249_v45  ;;  %v383_v62 = vadd.f32 %v381_v61, %v371_v57  ;;  %v401_v20 = vadd.f32 %v1600_v17, %v389_v40 }
  0xdf   : > { %v372_v15 = vadd.f32 %v2012_v51, %v362_v31  ;;  %v390_v63 = vadd.f32 %v1935_v7, %v1940_v34  ;;  %v347_v16 = vsel %vm346_vm0, %v343_v48, %v345_v0  ;;  %v348_v54 = vsel %vm346_vm0, %v345_v0, %v343_v48 }
  0xe0   : > { %v3099_v52 = vstv %s3090_s0  ;;  %v3100_v61 = vstv %s3091_s3  ;;  %v2286_v17 = vsel %vm338_vm1, %v347_v16, 0.0  ;;  %v2290_v7 = vsel %vm339_vm4, %v348_v54, 0.0  ;;  %v354_v16 = vpop.permute.xlu1 %353  ;;  %s3121_s0 = sld [smem:[#allocation41_spill]]  ;;  %s3123_s3 = sld [smem:[#allocation42_spill]] }
  0xe1   : > { %v406_v11 = vmul.f32 %v3099_v52, %v2163_v2  ;;  %v412_v57 = vmul.f32 %v3100_v61, %v2229_v38  ;;  %v395_v34 = vadd.f32 %v1618_v24, %v383_v62  ;;  %v413_v51 = vadd.f32 %v411_v10, %v401_v20  ;;  %v352_v22 = vpop.permute.xlu0 %351 }
  0xe2   : > { %v3101_v48 = vstv %s3098_s11  ;;  %v384_v31 = vadd.f32 %v2094_v50, %v372_v15  ;;  %v402_v40 = vadd.f32 %v1610_v21, %v390_v63  ;;  %v3102_v52 = vstv %s3092_s30  ;;  %s3143_s30 = sld [smem:[#allocation64_spill]] }
  0xe3   : > { %v429_v0 = vmul.f32 %v3101_v48, %v2286_v17  ;;  %v418_v61 = vmul.f32 %v3102_v52, %v2241_v3  ;;  %v407_v41 = vadd.f32 %v405_v1, %v395_v34  ;;  %v425_v54 = vadd.f32 %v423_v9, %v413_v51 }
  0xe4   : > { %v3105_v24 = vstv %s3093_s27  ;;  %v3106_v62 = vmov %v3101_v48  ;;  %v355_v50 = vsel %vm346_vm0, %v352_v22, %v354_v16  ;;  %v356_v21 = vsel %vm346_vm0, %v354_v16, %v352_v22  ;;  %s1319_s27 = smov 32  }
  0xe5   : > { %v424_v10 = vmul.f32 %v3105_v24, %v2253_v59  ;;  %v430_v20 = vmul.f32 %v3106_v62, %v2290_v7  ;;  %v396_v15 = vadd.f32 %v1630_v32, %v384_v31  ;;  %v414_v63 = vadd.f32 %v412_v57, %v402_v40 }
  0xe6   : > { %v2314_v1 = vsel %vm338_vm1, %v355_v50, 0.0  ;;  %v2318_v9 = vsel %vm339_vm4, %v356_v21, 0.0  ;;  %v419_v34 = vadd.f32 %v417_v56, %v407_v41  ;;  %v565_v51 = vadd.f32 %v2031_v47, %v555_v53 }
  0xe7   : > { %v3108_v48 = vstv %s3103_s17  ;;  %v408_v52 = vadd.f32 %v406_v11, %v396_v15  ;;  %v426_v32 = vadd.f32 %v424_v10, %v414_v63  ;;  %v3110_v31 = vstv %s3104_s13 }
  0xe8   : > { %v435_v22 = vmul.f32 %v3108_v48, %v2314_v1  ;;  %v3109_v57 = vmov %v3108_v48  ;;  %v2330_v36 = vmul.f32 %v3110_v31, %v2153_v5  ;;  %v431_v40 = vadd.f32 %v429_v0, %v419_v34 }
  0xe9   : > { %v436_v35 = vmul.f32 %v3109_v57, %v2318_v9  ;;  %v571_v56 = vadd.f32 %v1886_v26, %v1826_v23  ;;  %v577_v53 = vadd.f32 %v2089_v39, %v565_v51  ;;  %v420_v41 = vadd.f32 %v418_v61, %v408_v52 }
  0xea   : > { %v437_v47 = vadd.f32 %v435_v22, %v425_v54  ;;  %v3112_v11 = vstv %s3107_s19  ;;  %v3114_v5 = vstv %s1537_s29  ;;  %v3115_v23 = vstv %s2915_s2  ;;  %s3127_s2 = sld [smem:[#allocation62_spill]]  ;;  %s3130_s29 = sld [smem:[#allocation63_spill]] }
  0xeb   : > { %v438_v16 = vadd.f32 %v436_v35, %v426_v32  ;;  %v599_v24 = vmul.f32 %v3112_v11, %v2149_v6  ;;  %v583_v10 = vadd.f32 %v1962_v28, %v571_v56  ;;  %v589_v62 = vadd.f32 %v1652_v14, %v577_v53 }
  0xec   : > { %v605_v0 = vmul.f32 %v3114_v5, %v2225_v37  ;;  %v611_v26 = vmul.f32 %v3115_v23, %v2237_v55  ;;  %v439_v39 = vadd.f32 %v437_v47, %v431_v40  ;;  %v432_v54 = vadd.f32 %v430_v20, %v420_v41 }
  0xed   : > { %v3116_v61 = vstv %s2916_s24  ;;  %v3117_v21 = vstv %s3111_s1  ;;  %v595_v28 = vadd.f32 %v1633_v4, %v583_v10  ;;  %v601_v14 = vadd.f32 %v599_v24, %v589_v62  ;;  %s1318_s24 = smov 16  }
  0xee   : > { %v617_v50 = vmul.f32 %v3116_v61, %v2249_v45  ;;  %v623_v15 = vmul.f32 %v3117_v21, %v2286_v17  ;;  %v566_v63 = vadd.f32 %v2036_v58, %v2192_v18  ;;  %v572_v34 = vadd.f32 %v1890_v43, %v1830_v25  ;;  %447 = vrot.lane.b32.xlu0 %v439_v39, %s1317_s18 }
  0xef   : > { %v440_v20 = vadd.f32 %v438_v16, %v432_v54  ;;  %v3118_v51 = vstv %s3113_s8  ;;  %v3119_v22 = vmov %v3112_v11  ;;  %v3120_v4 = vmov %v3114_v5 }
  0xf0   : > { %v629_v48 = vmul.f32 %v3118_v51, %v2314_v1  ;;  %v600_v52 = vmul.f32 %v3119_v22, %v2163_v2  ;;  %v606_v32 = vmul.f32 %v3120_v4, %v2229_v38  ;;  %v607_v57 = vadd.f32 %v605_v0, %v595_v28 }
  0xf1   : > { %v578_v18 = vadd.f32 %v2104_v60, %v566_v63  ;;  %v584_v58 = vadd.f32 %v1958_v44, %v572_v34  ;;  %v3122_v25 = vmov %v3115_v23  ;;  %449 = vrot.lane.b32.xlu1 %v440_v20, %s1317_s18  ;;  %v613_v35 = vadd.f32 %v611_v26, %v601_v14  ;;  %v3134_v63 = vld [vmem:[#allocation135_spill] sm:$0xff] }
  0xf2   : > { %v612_v43 = vmul.f32 %v3122_v25, %v2241_v3  ;;  %v3124_v31 = vmov %v3116_v61  ;;  %v3125_v56 = vmov %v3117_v21  ;;  %v468_v47 = vadd.f32 %v2027_v8, %v2176_v19  ;;  %v3136_v20 = vld [vmem:[#allocation91_spill] sm:$0xff] }
  0xf3   : > { %v618_v40 = vmul.f32 %v3124_v31, %v2253_v59  ;;  %v624_v53 = vmul.f32 %v3125_v56, %v2290_v7  ;;  %v619_v60 = vadd.f32 %v617_v50, %v607_v57  ;;  %v590_v44 = vadd.f32 %v1665_v13, %v578_v18 }
  0xf4   : > { %v596_v41 = vadd.f32 %v1641_v27, %v584_v58  ;;  %v3126_v16 = vmov %v3118_v51  ;;  %v625_v24 = vadd.f32 %v623_v15, %v613_v35  ;;  %v474_v10 = vadd.f32 %v1878_v42, %v1818_v12  ;;  %v3137_v51 = vld [vmem:[#allocation99_spill] sm:$0xff] }
  0xf5   : > { %v630_v11 = vmul.f32 %v3126_v16, %v2318_v9  ;;  %v480_v62 = vadd.f32 %v2084_v49, %v468_v47  ;;  %v3128_v5 = vstv %s3121_s0  ;;  %v631_v8 = vadd.f32 %v629_v48, %v619_v60  ;;  %v3140_v58 = vld [vmem:[#allocation127_spill] sm:$0xff] }
  0xf6   : > { %v502_v0 = vmul.f32 %v3128_v5, %v2149_v6  ;;  %v602_v19 = vadd.f32 %v600_v52, %v590_v44  ;;  %v608_v23 = vadd.f32 %v606_v32, %v596_v41  ;;  %v3129_v13 = vstv %s3123_s3 }
  0xf7   : > { %v508_v26 = vmul.f32 %v3129_v13, %v2225_v37  ;;  %v486_v27 = vadd.f32 %v1948_v46, %v474_v10  ;;  %v492_v39 = vadd.f32 %v1687_v29, %v480_v62  ;;  %v3131_v54 = vstv %s1571_s4  ;;  %v3135_v29 = vld [vmem:[#allocation118_spill] sm:$0xff]  ;;  %v3147_v10 = vld [vmem:[#allocation67_spill] sm:$0xff]  ;;  %s3154_s4 = sld [smem:[#allocation65_spill]] }
  0xf8   : > { %v514_v12 = vmul.f32 %v3131_v54, %v2237_v55  ;;  %v3132_v42 = vstv %s1577_s7  ;;  %v633_v61 = vadd.f32 %v631_v8, %v625_v24  ;;  %v614_v50 = vadd.f32 %v612_v43, %v602_v19  ;;  %v3141_v43 = vld [vmem:[#allocation109_spill] sm:$0xff]  ;;  %s3158_s7 = sld [smem:[#allocation66_spill]] }
  0xf9   : > { %v520_v49 = vmul.f32 %v3132_v42, %v2249_v45  ;;  %v620_v21 = vadd.f32 %v618_v40, %v608_v23  ;;  %v3133_v15 = vstv %s3127_s2  ;;  %v498_v14 = vadd.f32 %v1644_v30, %v486_v27 }
  0xfa   : > { %v526_v28 = vmul.f32 %v3133_v15, %v2286_v17  ;;  %v504_v46 = vadd.f32 %v502_v0, %v492_v39  ;;  %v469_v34 = vadd.f32 %v3135_v29, %v3134_v63  ;;  %v475_v48 = vadd.f32 %v3137_v51, %v3136_v20  ;;  %641 = vrot.lane.b32.xlu0 %v633_v61, %s1318_s24  ;;  %v3152_v39 = vld [vmem:[#allocation93_spill] sm:$0xff] }
  0xfb   : > { %v626_v22 = vadd.f32 %v624_v53, %v614_v50  ;;  %v632_v52 = vadd.f32 %v630_v11, %v620_v21  ;;  %v3138_v4 = vstv %s3130_s29  ;;  %v3139_v57 = vmov %v3128_v5  ;;  %v3146_v11 = vld [vmem:[#allocation69_spill] sm:$0xff] }
  0xfc   : > { %v532_v32 = vmul.f32 %v3138_v4, %v2314_v1  ;;  %v503_v30 = vmul.f32 %v3139_v57, %v2163_v2  ;;  %v510_v18 = vadd.f32 %v508_v26, %v498_v14  ;;  %v481_v25 = vadd.f32 %v3140_v58, %v469_v34  ;;  %v3151_v26 = vld [vmem:[#allocation119_spill] sm:$0xff] }
  0xfd   : > { %v487_v35 = vadd.f32 %v3141_v43, %v475_v48  ;;  %v3142_v31 = vmov %v3129_v13  ;;  %v634_v56 = vadd.f32 %v632_v52, %v626_v22  ;;  %v516_v47 = vadd.f32 %v514_v12, %v504_v46  ;;  %v3150_v13 = vld [vmem:[#allocation137_spill] sm:$0xff]  ;;  %v3157_v46 = vld [vmem:[#allocation111_spill] sm:$0xff]  ;;  %v3165_v43 = vld [vmem:[#allocation138_spill] sm:$0xff] }
  0xfe   : > { %v509_v40 = vmul.f32 %v3142_v31, %v2229_v38  ;;  %v3144_v53 = vmov %v3131_v54  ;;  %v3145_v44 = vmov %v3132_v42  ;;  %v522_v16 = vadd.f32 %v520_v49, %v510_v18  ;;  %v3153_v54 = vld [vmem:[#allocation102_spill] sm:$0xff] }
  0xff   : > { %v515_v60 = vmul.f32 %v3144_v53, %v2241_v3  ;;  %v521_v41 = vmul.f32 %v3145_v44, %v2253_v59  ;;  %v493_v24 = vadd.f32 %v3146_v11, %v481_v25  ;;  %v499_v62 = vadd.f32 %v3147_v10, %v487_v35  ;;  %643 = vrot.lane.b32.xlu1 %v634_v56, %s1318_s24  ;;  %v3166_v35 = vld [vmem:[#allocation120_spill] sm:$0xff]  ;;  %v3169_v44 = vld [vmem:[#allocation103_spill] sm:$0xff] }
 0x100   : > { %v3148_v5 = vmov %v3133_v15  ;;  %v528_v8 = vadd.f32 %v526_v28, %v516_v47  ;;  %v3149_v19 = vmov %v3138_v4  ;;  %v748_v27 = vadd.f32 %v3151_v26, %v3150_v13  ;;  %v3156_v15 = vld [vmem:[#allocation128_spill] sm:$0xff] }
 0x101   : > { %v527_v0 = vmul.f32 %v3148_v5, %v2290_v7  ;;  %v533_v23 = vmul.f32 %v3149_v19, %v2318_v9  ;;  %v754_v12 = vadd.f32 %v3153_v54, %v3152_v39  ;;  %v534_v42 = vadd.f32 %v532_v32, %v522_v16  ;;  %v3162_v32 = vld [vmem:[#allocation73_spill] sm:$0xff]  ;;  %v3172_v19 = vld [vmem:[#allocation112_spill] sm:$0xff] }
 0x102   : > { %v505_v49 = vadd.f32 %v503_v30, %v493_v24  ;;  %v511_v61 = vadd.f32 %v509_v40, %v499_v62  ;;  %v3155_v50 = vstv %s3143_s30  ;;  %v760_v14 = vadd.f32 %v3156_v15, %v748_v27  ;;  %v3163_v30 = vld [vmem:[#allocation68_spill] sm:$0xff]  ;;  %v3170_v24 = vld [vmem:[#allocation129_spill] sm:$0xff] }
 0x103   : > { %v782_v21 = vmul.f32 %v3155_v50, %v2149_v6  ;;  %v766_v28 = vadd.f32 %v3157_v46, %v754_v12  ;;  %v3159_v63 = vstv %s1603_s23  ;;  %v3160_v34 = vstv %s1605_s6  ;;  %v3175_v12 = vld [vmem:[#allocation75_spill] sm:$0xff]  ;;  %v3179_v46 = vld [vmem:[#allocation140_spill] sm:$0xff]  ;;  %s1320_s6 = smov 112   ;;  %s3218_s23 = sld [smem:[#allocation72_spill]] }
 0x104   : > { %v788_v29 = vmul.f32 %v3159_v63, %v2225_v37  ;;  %v794_v20 = vmul.f32 %v3160_v34, %v2237_v55  ;;  %v536_v51 = vadd.f32 %v534_v42, %v528_v8  ;;  %v517_v48 = vadd.f32 %v515_v60, %v505_v49  ;;  %v3168_v60 = vld [vmem:[#allocation94_spill] sm:$0xff] }
 0x105   : > { %v523_v22 = vadd.f32 %v521_v41, %v511_v61  ;;  %v3161_v52 = vstv %s1613_s25  ;;  %v772_v57 = vadd.f32 %v3162_v32, %v760_v14  ;;  %v778_v18 = vadd.f32 %v3163_v30, %v766_v28  ;;  %v3180_v28 = vld [vmem:[#allocation122_spill] sm:$0xff]  ;;  %s3232_s25 = sld [smem:[#allocation39_spill]] }
 0x106   : > { %v800_v4 = vmul.f32 %v3161_v52, %v2249_v45  ;;  %v3164_v58 = vstv %s3154_s4  ;;  %v749_v31 = vadd.f32 %v3166_v35, %v3165_v43  ;;  %544 = vrot.lane.b32.xlu0 %v536_v51, %s1319_s27  ;;  %v529_v40 = vadd.f32 %v527_v0, %v517_v48 }
 0x107   : > { %v806_v25 = vmul.f32 %v3164_v58, %v2286_v17  ;;  %v535_v56 = vadd.f32 %v533_v23, %v523_v22  ;;  %v3167_v47 = vstv %s3158_s7  ;;  %v755_v41 = vadd.f32 %v3169_v44, %v3168_v60  ;;  %v3189_v44 = vld [vmem:[#allocation82_spill] sm:$0xff] }
 0x108   : > { %v812_v53 = vmul.f32 %v3167_v47, %v2314_v1  ;;  %v784_v16 = vadd.f32 %v782_v21, %v772_v57  ;;  %v790_v11 = vadd.f32 %v788_v29, %v778_v18  ;;  %v761_v10 = vadd.f32 %v3170_v24, %v749_v31  ;;  %v3181_v29 = vld [vmem:[#allocation95_spill] sm:$0xff]  ;;  %v3184_v57 = vld [vmem:[#allocation130_spill] sm:$0xff]  ;;  %v3185_v18 = vld [vmem:[#allocation113_spill] sm:$0xff] }
 0x109   : > { %v3171_v62 = vmov %v3155_v50  ;;  %v537_v8 = vadd.f32 %v535_v56, %v529_v40  ;;  %v767_v13 = vadd.f32 %v3172_v19, %v755_v41  ;;  %v3173_v0 = vmov %v3159_v63  ;;  %v3177_v50 = vld [vmem:[#allocation70_spill] sm:$0xff]  ;;  %v3193_v19 = vld [vmem:[#allocation141_spill] sm:$0xff] }
 0x10a   : > { %v783_v5 = vmul.f32 %v3171_v62, %v2163_v2  ;;  %v789_v23 = vmul.f32 %v3173_v0, %v2229_v38  ;;  %v3174_v26 = vmov %v3160_v34  ;;  %v796_v39 = vadd.f32 %v794_v20, %v784_v16  ;;  %v3182_v34 = vld [vmem:[#allocation105_spill] sm:$0xff] }
 0x10b   : > { %v795_v27 = vmul.f32 %v3174_v26, %v2241_v3  ;;  %v802_v54 = vadd.f32 %v800_v4, %v790_v11  ;;  %v773_v42 = vadd.f32 %v3175_v12, %v761_v10  ;;  %v3176_v49 = vmov %v3161_v52  ;;  %546 = vrot.lane.b32.xlu1 %v537_v8, %s1319_s27  ;;  %v3190_v16 = vld [vmem:[#allocation71_spill] sm:$0xff]  ;;  %v3196_v26 = vld [vmem:[#allocation106_spill] sm:$0xff] }
 0x10c   : > { %v801_v61 = vmul.f32 %v3176_v49, %v2253_v59  ;;  %v779_v21 = vadd.f32 %v3177_v50, %v767_v13  ;;  %v3178_v15 = vmov %v3164_v58  ;;  %v847_v63 = vadd.f32 %v3180_v28, %v3179_v46  ;;  %v3194_v13 = vld [vmem:[#allocation123_spill] sm:$0xff] }
 0x10d   : > { %v807_v14 = vmul.f32 %v3178_v15, %v2290_v7  ;;  %v853_v20 = vadd.f32 %v3182_v34, %v3181_v29  ;;  %v808_v51 = vadd.f32 %v806_v25, %v796_v39  ;;  %v814_v48 = vadd.f32 %v812_v53, %v802_v54  ;;  %v3200_v15 = vld [vmem:[#allocation131_spill] sm:$0xff] }
 0x10e   : > { %v785_v22 = vadd.f32 %v783_v5, %v773_v42  ;;  %v3183_v52 = vmov %v3167_v47  ;;  %v791_v32 = vadd.f32 %v789_v23, %v779_v21  ;;  %v859_v30 = vadd.f32 %v3184_v57, %v847_v63  ;;  %v3195_v23 = vld [vmem:[#allocation96_spill] sm:$0xff]  ;;  %v3201_v46 = vld [vmem:[#allocation115_spill] sm:$0xff] }
 0x10f   : > { %v813_v4 = vmul.f32 %v3183_v52, %v2318_v9  ;;  %v865_v58 = vadd.f32 %v3185_v18, %v853_v20  ;;  %v3186_v43 = vstv %s1647_s26  ;;  %v816_v31 = vadd.f32 %v814_v48, %v808_v51  ;;  %v3204_v52 = vld [vmem:[#allocation83_spill] sm:$0xff]  ;;  %s3255_s26 = sld [smem:[#allocation76_spill]] }
 0x110   : > { %v887_v35 = vmul.f32 %v3186_v43, %v2225_v37  ;;  %v797_v40 = vadd.f32 %v795_v27, %v785_v22  ;;  %v3187_v56 = vstv %s1637_s15  ;;  %v3188_v47 = vstv %s1649_s9  ;;  %s3211_s15 = sld [smem:[#allocation58_spill]]  ;;  %s3215_s9 = sld [smem:[#allocation59_spill]] }
 0x111   : > { %v881_v25 = vmul.f32 %v3187_v56, %v2149_v6  ;;  %v893_v53 = vmul.f32 %v3188_v47, %v2237_v55  ;;  %v803_v60 = vadd.f32 %v801_v61, %v791_v32  ;;  %v871_v41 = vadd.f32 %v3189_v44, %v859_v30  ;;  %824 = vrot.lane.b32.xlu0 %v816_v31, %s1320_s6  ;;  %v3198_v61 = vld [vmem:[#allocation134_spill] sm:$0xff]  ;;  %v3205_v32 = vld [vmem:[#allocation78_spill] sm:$0xff] }
 0x112   : > { %v877_v11 = vadd.f32 %v3190_v16, %v865_v58  ;;  %v3191_v24 = vstv %s1657_s20  ;;  %v809_v62 = vadd.f32 %v807_v14, %v797_v40  ;;  %v3192_v5 = vstv %s1667_s16  ;;  %v3208_v40 = vld [vmem:[#allocation124_spill] sm:$0xff]  ;;  %s1322_s20 = smov 80   ;;  %s3262_s16 = sld [smem:[#allocation80_spill]] }
 0x113   : > { %v899_v10 = vmul.f32 %v3191_v24, %v2249_v45  ;;  %v905_v8 = vmul.f32 %v3192_v5, %v2286_v17  ;;  %v848_v0 = vadd.f32 %v3194_v13, %v3193_v19  ;;  %v854_v27 = vadd.f32 %v3196_v26, %v3195_v23 }
 0x114   : > { %v815_v39 = vadd.f32 %v813_v4, %v803_v60  ;;  %v883_v54 = vadd.f32 %v881_v25, %v871_v41  ;;  %v889_v12 = vadd.f32 %v887_v35, %v877_v11  ;;  %v3197_v42 = vstv %s1669_s21  ;;  %v3209_v25 = vld [vmem:[#allocation97_spill] sm:$0xff]  ;;  %s1321_s21 = smov 96  }
 0x115   : > { %v911_v49 = vmul.f32 %v3197_v42, %v2314_v1  ;;  %v3199_v50 = vstv %s3104_s13  ;;  %v860_v14 = vadd.f32 %v3200_v15, %v848_v0  ;;  %v866_v28 = vadd.f32 %v3201_v46, %v854_v27  ;;  %s3280_s13 = sld [smem:[#allocation144_spill]] }
 0x116   : > { %v937_v21 = vmul.f32 %v3199_v50, %v3198_v61  ;;  %v3202_v63 = vmov %v3186_v43  ;;  %v817_v34 = vadd.f32 %v815_v39, %v809_v62  ;;  %v895_v20 = vadd.f32 %v893_v53, %v883_v54  ;;  %v3214_v62 = vld [vmem:[#allocation132_spill] sm:$0xff] }
 0x117   : > { %v888_v29 = vmul.f32 %v3202_v63, %v2229_v38  ;;  %v901_v51 = vadd.f32 %v899_v10, %v889_v12  ;;  %v3203_v48 = vmov %v3187_v56  ;;  %v872_v4 = vadd.f32 %v3204_v52, %v860_v14  ;;  %v3221_v12 = vld [vmem:[#allocation85_spill] sm:$0xff]  ;;  %v3224_v14 = vld [vmem:[#allocation126_spill] sm:$0xff] }
 0x118   : > { %v882_v22 = vmul.f32 %v3203_v48, %v2163_v2  ;;  %v878_v57 = vadd.f32 %v3205_v32, %v866_v28  ;;  %v3206_v30 = vmov %v3188_v47  ;;  %v3207_v58 = vmov %v3191_v24  ;;  %826 = vrot.lane.b32.xlu1 %v817_v34, %s1320_s6  ;;  %v3210_v47 = vld [vmem:[#allocation107_spill] sm:$0xff] }
 0x119   : > { %v894_v18 = vmul.f32 %v3206_v30, %v2241_v3  ;;  %v900_v43 = vmul.f32 %v3207_v58, %v2253_v59  ;;  %v907_v35 = vadd.f32 %v905_v8, %v895_v20  ;;  %v913_v31 = vadd.f32 %v911_v49, %v901_v51  ;;  %v3216_v8 = vld [vmem:[#allocation116_spill] sm:$0xff]  ;;  %v3222_v49 = vld [vmem:[#allocation79_spill] sm:$0xff]  ;;  %v3226_v20 = vld [vmem:[#allocation98_spill] sm:$0xff] }
 0x11a   : > { %v946_v56 = vadd.f32 %v3208_v40, %v2330_v36  ;;  %v952_v53 = vadd.f32 %v3210_v47, %v3209_v25  ;;  %v884_v60 = vadd.f32 %v882_v22, %v872_v4  ;;  %v890_v44 = vadd.f32 %v888_v29, %v878_v57  ;;  %v3227_v51 = vld [vmem:[#allocation108_spill] sm:$0xff]  ;;  %v3229_v57 = vld [vmem:[#allocation133_spill] sm:$0xff]  ;;  %v3234_v47 = vld [vmem:[#allocation86_spill] sm:$0xff] }
 0x11b   : > { %v3212_v41 = vmov %v3192_v5  ;;  %v3213_v11 = vmov %v3197_v42  ;;  %v915_v10 = vadd.f32 %v913_v31, %v907_v35  ;;  %v3217_v36 = vstv %s1682_s28  ;;  %s3258_s28 = sld [smem:[#allocation77_spill]] }
 0x11c   : > { %v906_v16 = vmul.f32 %v3212_v41, %v2290_v7  ;;  %v912_v24 = vmul.f32 %v3213_v11, %v2318_v9  ;;  %v958_v5 = vadd.f32 %v3214_v62, %v946_v56  ;;  %v964_v19 = vadd.f32 %v3216_v8, %v952_v53  ;;  %v3236_v41 = vld [vmem:[#allocation104_spill] sm:$0xff] }
 0x11d   : > { %v986_v13 = vmul.f32 %v3217_v36, %v2225_v37  ;;  %v896_v0 = vadd.f32 %v894_v18, %v884_v60  ;;  %v902_v23 = vadd.f32 %v900_v43, %v890_v44  ;;  %v3219_v26 = vstv %s1680_s12  ;;  %923 = vrot.lane.b32.xlu0 %v915_v10, %s1321_s21  ;;  %v3230_v18 = vld [vmem:[#allocation117_spill] sm:$0xff]  ;;  %s3265_s12 = sld [smem:[#allocation81_spill]] }
 0x11e   : > { %v980_v27 = vmul.f32 %v3219_v26, %v2149_v6  ;;  %v3220_v39 = vstv %s1692_s22  ;;  %v970_v42 = vadd.f32 %v3221_v12, %v958_v5  ;;  %v976_v61 = vadd.f32 %v3222_v49, %v964_v19  ;;  %v3240_v5 = vld [vmem:[#allocation84_spill] sm:$0xff]  ;;  %s3249_s22 = sld [smem:[#allocation74_spill]] }
 0x11f   : > { %v992_v54 = vmul.f32 %v3220_v39, %v2237_v55  ;;  %v3223_v50 = vstv %s3211_s15  ;;  %v947_v46 = vadd.f32 %v3224_v14, %v937_v21  ;;  %v908_v28 = vadd.f32 %v906_v16, %v896_v0 }
 0x120   : > { %v998_v15 = vmul.f32 %v3223_v50, %v2249_v45  ;;  %v914_v63 = vadd.f32 %v912_v24, %v902_v23  ;;  %v3225_v29 = vstv %s3215_s9  ;;  %v953_v48 = vadd.f32 %v3227_v51, %v3226_v20  ;;  %v3238_v24 = vld [vmem:[#allocation114_spill] sm:$0xff]  ;;  %v3251_v20 = vld [vmem:[#allocation100_spill] sm:$0xff] }
 0x121   : > { %v1004_v34 = vmul.f32 %v3225_v29, %v2286_v17  ;;  %v982_v22 = vadd.f32 %v980_v27, %v970_v42  ;;  %v988_v52 = vadd.f32 %v986_v13, %v976_v61  ;;  %v3228_v4 = vstv %s3218_s23  ;;  %v3245_v42 = vld [vmem:[#allocation125_spill] sm:$0xff] }
 0x122   : > { %v1010_v32 = vmul.f32 %v3228_v4, %v2314_v1  ;;  %v959_v30 = vadd.f32 %v3229_v57, %v947_v46  ;;  %v916_v21 = vadd.f32 %v914_v63, %v908_v28  ;;  %v965_v58 = vadd.f32 %v3230_v18, %v953_v48  ;;  %v3248_v63 = vld [vmem:[#allocation136_spill] sm:$0xff] }
 0x123   : > { %v3231_v43 = vmov %v3219_v26  ;;  %v3233_v31 = vmov %v3217_v36  ;;  %v994_v56 = vadd.f32 %v992_v54, %v982_v22  ;;  %v1000_v25 = vadd.f32 %v998_v15, %v988_v52  ;;  %v3252_v22 = vld [vmem:[#allocation139_spill] sm:$0xff] }
 0x124   : > { %v981_v35 = vmul.f32 %v3231_v43, %v2163_v2  ;;  %v987_v40 = vmul.f32 %v3233_v31, %v2229_v38  ;;  %v971_v53 = vadd.f32 %v3234_v47, %v959_v30  ;;  %v3235_v60 = vmov %v3220_v39  ;;  %925 = vrot.lane.b32.xlu1 %v916_v21, %s1321_s21  ;;  %v3243_v39 = vld [vmem:[#allocation121_spill] sm:$0xff]  ;;  %v3260_v47 = vld [vmem:[#allocation87_spill] sm:$0xff] }
 0x125   : > { %v993_v44 = vmul.f32 %v3235_v60, %v2241_v3  ;;  %v3237_v16 = vstv %s2978_s5  ;;  %v3239_v10 = vstv %s3009_s10  ;;  %v977_v8 = vadd.f32 %v3240_v5, %v965_v58  ;;  %s3277_s5 = sld [smem:[#allocation7_spill]] }
 0x126   : > { %v681_v11 = vmul.f32 %v3237_v16, %v3236_v41  ;;  %v663_v62 = vmul.f32 %v3239_v10, %v3238_v24  ;;  %v3241_v19 = vmov %v3223_v50  ;;  %v1006_v13 = vadd.f32 %v1004_v34, %v994_v56  ;;  %v3250_v34 = vld [vmem:[#allocation92_spill] sm:$0xff]  ;;  %v3259_v56 = vld [vmem:[#allocation89_spill] sm:$0xff] }
 0x127   : > { %v999_v36 = vmul.f32 %v3241_v19, %v2253_v59  ;;  %v1012_v0 = vadd.f32 %v1010_v32, %v1000_v25  ;;  %v983_v23 = vadd.f32 %v981_v35, %v971_v53  ;;  %v3242_v26 = vmov %v3225_v29  ;;  %v3254_v32 = vld [vmem:[#allocation110_spill] sm:$0xff]  ;;  %v3264_v16 = vld [vmem:[#allocation88_spill] sm:$0xff] }
 0x128   : > { %v1005_v27 = vmul.f32 %v3242_v26, %v2290_v7  ;;  %v3244_v54 = vstv %s3232_s25  ;;  %v989_v50 = vadd.f32 %v987_v40, %v977_v8  ;;  %v3247_v15 = vmov %v3228_v4  ;;  %v3253_v4 = vld [vmem:[#allocation101_spill] sm:$0xff] }
 0x129   : > { %v674_v12 = vmul.f32 %v3244_v54, %v3243_v39  ;;  %v3246_v49 = vmov %v3244_v54  ;;  %v1011_v14 = vmul.f32 %v3247_v15, %v2318_v9  ;;  %v1014_v46 = vadd.f32 %v1012_v0, %v1006_v13 }
 0x12a   : > { %v675_v61 = vmul.f32 %v3246_v49, %v3245_v42  ;;  %v995_v28 = vadd.f32 %v993_v44, %v983_v23  ;;  %v665_v29 = vadd.f32 %v663_v62, %v3248_v63  ;;  %v671_v51 = vadd.f32 %v3251_v20, %v3250_v34  ;;  %v3263_v44 = vld [vmem:[#allocation90_spill] sm:$0xff] }
 0x12b   : > { %v1001_v48 = vadd.f32 %v999_v36, %v989_v50  ;;  %v676_v52 = vadd.f32 %v674_v12, %v3252_v22  ;;  %v682_v57 = vadd.f32 %v3254_v32, %v3253_v4  ;;  %v3256_v30 = vstv %s1724_s14  ;;  %1022 = vrot.lane.b32.xlu0 %v1014_v46, %s1322_s20  ;;  %s3276_s14 = sld [smem:[#allocation6_spill]] }
 0x12c   : > { %v698_v21 = vmul.f32 %v3256_v30, %v2149_v6  ;;  %v1007_v18 = vadd.f32 %v1005_v27, %v995_v28  ;;  %v677_v58 = vadd.f32 %v675_v61, %v665_v29  ;;  %v683_v43 = vadd.f32 %v681_v11, %v671_v51 }
 0x12d   : > { %v3257_v35 = vmov %v3256_v30  ;;  %v1013_v40 = vadd.f32 %v1011_v14, %v1001_v48  ;;  %v688_v25 = vadd.f32 %v3259_v56, %v676_v52  ;;  %v694_v53 = vadd.f32 %v3260_v47, %v682_v57 }
 0x12e   : > { %v699_v31 = vmul.f32 %v3257_v35, %v2163_v2  ;;  %v3261_v60 = vstv %s3249_s22  ;;  %v689_v41 = vadd.f32 %v3263_v44, %v677_v58  ;;  %v695_v11 = vadd.f32 %v3264_v16, %v683_v43 }
 0x12f   : > { %v704_v6 = vmul.f32 %v3261_v60, %v2225_v37  ;;  %v3266_v24 = vmov %v3261_v60  ;;  %v3267_v2 = vstv %s3255_s26  ;;  %v1015_v5 = vadd.f32 %v1013_v40, %v1007_v18  ;;  %v3275_v18 = vld [vmem:[#allocation48_spill] sm:$0xff] }
 0x130   : > { %v705_v10 = vmul.f32 %v3266_v24, %v2229_v38  ;;  %v710_v62 = vmul.f32 %v3267_v2, %v2237_v55  ;;  %v700_v8 = vadd.f32 %v698_v21, %v688_v25  ;;  %v3268_v36 = vmov %v3267_v2 }
 0x131   : > { %v706_v19 = vadd.f32 %v704_v6, %v694_v53  ;;  %v711_v13 = vmul.f32 %v3268_v36, %v2241_v3  ;;  %v701_v37 = vadd.f32 %v699_v31, %v689_v41  ;;  %v3269_v23 = vstv %s3258_s28  ;;  %1024 = vrot.lane.b32.xlu1 %v1015_v5, %s1322_s20  ;;  %s3279_s10 = sshll.u32 %s3276_s14, 3 }
 0x132   : > { %v707_v0 = vadd.f32 %v705_v10, %v695_v11  ;;  %v716_v26 = vmul.f32 %v3269_v23, %v2249_v45  ;;  %v3270_v27 = vmov %v3269_v23  ;;  %v712_v38 = vadd.f32 %v710_v62, %v700_v8  ;;  %s157_s19 = scalar_lea.vmem %s3280_s13, %s3279_s10 }
 0x133   : > { %v717_v39 = vmul.f32 %v3270_v27, %v2253_v59  ;;  %v3271_v54 = vstv %s3262_s16  ;;  %v3273_v49 = vstv %s3265_s12  ;;  %v713_v3 = vadd.f32 %v711_v13, %v701_v37 }
 0x134   : > { %v722_v55 = vmul.f32 %v3271_v54, %v2286_v17  ;;  %v3272_v12 = vmov %v3271_v54  ;;  %v728_v61 = vmul.f32 %v3273_v49, %v2314_v1  ;;  %v718_v50 = vadd.f32 %v716_v26, %v706_v19 }
 0x135   : > { %v723_v42 = vmul.f32 %v3272_v12, %v2290_v7  ;;  %v719_v15 = vadd.f32 %v717_v39, %v707_v0  ;;  %v3274_v14 = vmov %v3273_v49  ;;  %vm645_vm2 = vcmp.lt.s32.totalorder %v1468_v33, 16 }
 0x136   : > { %v729_v45 = vmul.f32 %v3274_v14, %v2318_v9  ;;  %v724_v46 = vadd.f32 %v722_v55, %v712_v38  ;;  %v730_v59 = vadd.f32 %v728_v61, %v718_v50  ;;  %vm451_vm3 = vcmp.lt.s32.totalorder %v1468_v33, 48 }
 0x137   : > { %v725_v28 = vadd.f32 %v723_v42, %v713_v3  ;;  %vm548_vm5 = vcmp.lt.s32.totalorder %v1468_v33, 32  ;;  %vm635_vm6 = vcmp.ge.s32.totalorder %v1468_v33, 16  ;;  %vm828_vm7 = vcmp.lt.s32.totalorder %v1468_v33, 112 }
 0x138   : > { %v731_v63 = vadd.f32 %v729_v45, %v719_v15  ;;  %v732_v29 = vadd.f32 %v730_v59, %v724_v46  ;;  %vm441_vm8 = vcmp.ge.s32.totalorder %v1468_v33, 48  ;;  %vm538_vm9 = vcmp.ge.s32.totalorder %v1468_v33, 32  ;;  %v1282_v45 = vld [vmem:[%s3277_s5] sm:$0xff] }
 0x139   : > { %vm927_vm10 = vcmp.lt.s32.totalorder %v1468_v33, 96  ;;  %vm821_vm11 = vcmp.lt.s32.totalorder %v3275_v18, 240  ;;  %vm920_vm12 = vcmp.lt.s32.totalorder %v3275_v18, 224  ;;  %vm1026_vm13 = vcmp.lt.s32.totalorder %v1468_v33, 80 }
 0x13a   : > { %v733_v34 = vadd.f32 %v731_v63, %v725_v28  ;;  %vm1019_vm14 = vcmp.lt.s32.totalorder %v3275_v18, 208  ;;  %v3278_v33 = vlaneseq }
 0x13c   : > { %v1048_v42 = vshrl.u32 %v3278_v33, 7 }
 0x13e   : > { %v1049_v49 = vsub.s32 0, %v1048_v42 }
 0x160   : > { %v448_v20 = vpop.permute.xlu0 %447 }
 0x163   : > { %v450_v17 = vpop.permute.xlu1 %449 }
 0x164   : > { %v453_v32 = vsel %vm451_vm3, %v450_v17, %v448_v20  ;;  %v452_v25 = vsel %vm451_vm3, %v448_v20, %v450_v17 }
 0x165   : > { %v454_v35 = vsel %vm441_vm8, %v453_v32, 0.0 }
 0x16c   : > { %v642_v51 = vpop.permute.xlu0 %641 }
 0x171   : > { %v644_v48 = vpop.permute.xlu1 %643 }
 0x172   : > { %v647_v9 = vsel %vm645_vm2, %v644_v48, %v642_v51  ;;  %v646_v43 = vsel %vm645_vm2, %v642_v51, %v644_v48 }
 0x173   : > { %v648_v21 = vsel %vm635_vm6, %v647_v9, 0.0  ;;  %v651_v44 = vadd.f32 %v646_v43, %v452_v25 }
 0x174   : > { %v650_v47 = vadd.f32 %v648_v21, %v454_v35 }
 0x178   : > { %v545_v7 = vpop.permute.xlu0 %544 }
 0x17d   : > { %v547_v22 = vpop.permute.xlu1 %546 }
 0x17e   : > { %v550_v57 = vsel %vm548_vm5, %v547_v22, %v545_v7  ;;  %v549_v53 = vsel %vm548_vm5, %v545_v7, %v547_v22 }
 0x17f   : > { %v551_v31 = vsel %vm538_vm9, %v550_v57, 0.0  ;;  %v735_v2 = vadd.f32 %v733_v34, %v549_v53 }
 0x180   : > { %v734_v16 = vadd.f32 %v732_v29, %v551_v31 }
 0x183   : > { %v825_v52 = vpop.permute.xlu0 %824 }
 0x18a   : > { %v827_v1 = vpop.permute.xlu1 %826 }
 0x18b   : > { %v830_v58 = vsel %vm828_vm7, %v827_v1, %v825_v52  ;;  %v829_v40 = vsel %vm828_vm7, %v825_v52, %v827_v1 }
 0x18c   : > { %v832_v60 = vsel %vm821_vm11, %v830_v58, 0.0  ;;  %v833_v11 = vadd.f32 %v829_v40, %v650_v47 }
 0x18d   : > { %v834_v62 = vadd.f32 %v832_v60, %v651_v44 }
 0x18f   : > { %v924_v4 = vpop.permute.xlu0 %923 }
 0x196   : > { %v926_v30 = vpop.permute.xlu1 %925 }
 0x197   : > { %v929_v56 = vsel %vm927_vm10, %v926_v30, %v924_v4  ;;  %v928_v41 = vsel %vm927_vm10, %v924_v4, %v926_v30 }
 0x198   : > { %v931_v24 = vsel %vm920_vm12, %v929_v56, 0.0  ;;  %v932_v19 = vadd.f32 %v928_v41, %v734_v16 }
 0x199   : > { %v933_v37 = vadd.f32 %v931_v24, %v735_v2 }
 0x19d   : > { %v1023_v6 = vpop.permute.xlu0 %1022 }
 0x1a3   : > { %v1025_v10 = vpop.permute.xlu1 %1024 }
 0x1a4   : > { %v1027_v5 = vsel %vm1026_vm13, %v1023_v6, %v1025_v10  ;;  %v1028_v8 = vsel %vm1026_vm13, %v1025_v10, %v1023_v6 }
 0x1a5   : > { %v1030_v36 = vsel %vm1019_vm14, %v1028_v8, 0.0  ;;  %v1031_v13 = vadd.f32 %v1027_v5, %v833_v11 }
 0x1a6   : > { %v1032_v0 = vadd.f32 %v1030_v36, %v834_v62 }
 0x1a7   : > { %v1033_v23 = vadd.f32 %v1031_v13, %v932_v19 }
 0x1a8   : > { %v1034_v26 = vadd.f32 %v1032_v0, %v933_v37 }
 0x1a9   : > { %v1236_v27 = vmul.f32 -1.442695, %v1033_v23 }
 0x1aa   : > { %v1237_v39 = vmul.f32 -1.442695, %v1034_v26 }
 0x1ab   : > { %1274 = vpow2.f32 %v1236_v27 }
 0x1ac   : > { %1276 = vpow2.f32 %v1237_v39 }
 0x1b5   : > { %v1275_v38 = vpop.eup %1274 }
 0x1b6   : > { %v1277_v54 = vpop.eup %1276  ;;  %v1041_v55 = vadd.f32 1.0, %v1275_v38 }
 0x1b7   : > { %v1042_v12 = vadd.f32 1.0, %v1277_v54 }
 0x1b8   : > { %1278 = vrcp.f32 %v1041_v55 }
 0x1b9   : > { %1280 = vrcp.f32 %v1042_v12 }
 0x1c2   : > { %v1279_v61 = vpop.eup %1278 }
 0x1c3   : > { %v1281_v3 = vpop.eup %1280  ;;  %v1050_v50 = vrot.slane %v1279_v61, %v1049_v49 }
 0x1c4   : > { %v1054_v15 = vrot.slane %v1281_v3, %v1049_v49 }
 0x1c6   : > { %v1057_v14 = vcombine.low %v1050_v50, %v1054_v15 }
 0x1c8   : > { %v1059_v46 = vmul.f32 %v1282_v45, %v1057_v14 }
 0x1ca   : > { %1060 = vst [vmem:[%s157_s19] sm:$0xff] %v1059_v46 }
 0x1cb PF: > { %s3281_s1 = sld [smem:[#allocation5_spill]] }
 0x1d1   : > { %s13_s9 = sadd.s32 1, %s3281_s1  }
 0x1d2   : > { %p10_p1 = scmp.ge.s32.totalorder %s13_s9, 4  }
 0x1d4   :  { %12 = sbr.rel (!%p10_p1) target bundleno = 5 (0x5), region = 63 }
 0x1db   :  { %1082 = vsyncpa [#allocation3], 1 }
 0x1dc   :  { %1084 = vsyncpa [#allocation3 + $0x1], 1 }

</bundles_post_ra>
